<compile_context>
chip_gen: v7x
topology: tpu7x:2x2x1
jax: 0.10.0
libtpu: 0.0.40
codegen_flags: <defaults>
</compile_context>

<pallas_src>
import math

import jax
import jax.numpy as jnp
from jax.experimental import pallas as pl
from jax.experimental.pallas import tpu as pltpu

LN_EPS = 1e-5  # PyTorch nn.LayerNorm default

# Row indices inside the packed (8, H) per-feature-vector block.
_B1, _G1, _BE1, _B2, _G2, _BE2 = 0, 1, 2, 3, 4, 5


def _layernorm(h, gamma, beta):
    # Lane-axis reductions -> XLU, rsqrt -> EUP; everything else stays as
    # multiplies so the VPU slot is not the binding unit.
    mu = jnp.mean(h, axis=-1, keepdims=True)
    c = h - mu
    var = jnp.mean(c * c, axis=-1, keepdims=True)
    inv = jax.lax.rsqrt(var + LN_EPS)
    return c * inv * gamma + beta


def mlp_model_kernel(x_ref, w1_ref, w2_ref, vecs_ref, w3_ref, b3_ref,
                     o_ref, h_ref):
    # grid = (batch tiles [parallel], nb_gos tiles [arbitrary]).
    j = pl.program_id(1)

    # The shared trunk depends only on the batch tile: compute it once per
    # batch tile (at j == 0), cache it in VMEM scratch, and reuse it for every
    # output-feature tile.
    @pl.when(j == 0)
    def _():
        cdt = w1_ref.dtype
        x = x_ref[...]

        b1 = vecs_ref[_B1:_B1 + 1, :]
        g1 = vecs_ref[_G1:_G1 + 1, :]
        be1 = vecs_ref[_BE1:_BE1 + 1, :]
        b2 = vecs_ref[_B2:_B2 + 1, :]
        g2 = vecs_ref[_G2:_G2 + 1, :]
        be2 = vecs_ref[_BE2:_BE2 + 1, :]

        # --- MLPBlock(input_length, hidden): Linear -> ReLU -> LayerNorm ---
        h = jnp.dot(x, w1_ref[...], preferred_element_type=jnp.float32) + b1
        h = jnp.maximum(h, 0.0)
        h = _layernorm(h, g1, be1)
        # Dropout(0.75): identity in eval mode.

        # --- Residual(MLPBlock(hidden, hidden)) ---
        r = jnp.dot(h.astype(cdt), w2_ref[...], preferred_element_type=jnp.float32) + b2
        r = jnp.maximum(r, 0.0)
        r = _layernorm(r, g2, be2)

        h_ref[...] = h + r

    # --- task_net head on this nb_gos tile: Linear + Sigmoid ---
    y = jnp.dot(h_ref[...].astype(w3_ref.dtype), w3_ref[...],
                preferred_element_type=jnp.float32) + b3_ref[...]
    o_ref[...] = jax.nn.sigmoid(y)


def mlp_model_forward(x, params, *, tb=128, compute_dtype=jnp.float32):
    """x: [B, D_in] float32. params: dict of weights (see init_params)."""
    B, D_in = x.shape
    H = params["w1t"].shape[1]
    G = params["w3t"].shape[1]

    # --- tile / padding plan -------------------------------------------------
    TB = max(8, tb - (tb % 8))                 # batch tile: multiple of 8 (f32 sublane)
    B_pad = pl.cdiv(B, TB) * TB
    D_pad = pl.cdiv(D_in, 128) * 128           # lane-dense x / W1 loads
    G_pad = pl.cdiv(G, 128) * 128              # lane-dense output: full vst, no masked stores
    TG = next(t for t in (512, 256, 128) if G_pad % t == 0)
    grid = (B_pad // TB, G_pad // TG)

    # --- operand packing / padding (wrapper-side, cheap one-time work) -------
    # Zero-padding extra x columns and the matching W1 rows keeps x @ W1 exact.
    if B_pad != B or D_pad != D_in:
        x_p = jnp.pad(x, ((0, B_pad - B), (0, D_pad - D_in)))
    else:
        x_p = x
    w1_p = (jnp.pad(params["w1t"], ((0, D_pad - D_in), (0, 0)))
            if D_pad != D_in else params["w1t"])
    w3_p = (jnp.pad(params["w3t"], ((0, 0), (0, G_pad - G)))
            if G_pad != G else params["w3t"])
    b3_p = (jnp.pad(params["b3"], ((0, 0), (0, G_pad - G)))
            if G_pad != G else params["b3"])

    # Pack the six (1, H) bias / LayerNorm vectors into one (8, H) block -> 1 DMA.
    vecs = jnp.concatenate(
        [params["b1"], params["g1"], params["be1"],
         params["b2"], params["g2"], params["be2"],
         jnp.zeros((2, H), jnp.float32)], axis=0)

    # Optional bf16 MXU path (accumulation stays f32 via preferred_element_type).
    x_p = x_p.astype(compute_dtype)
    w1 = w1_p.astype(compute_dtype)
    w2 = params["w2t"].astype(compute_dtype)
    w3_p = w3_p.astype(compute_dtype)

    itm = jnp.dtype(compute_dtype).itemsize
    cost = pl.CostEstimate(
        flops=2 * B_pad * (D_pad * H + H * H + H * G_pad),
        transcendentals=B_pad * (G_pad + 2),     # sigmoid exp per output + 2 rsqrt per row
        bytes_accessed=(x_p.size + w1.size + w2.size + w3_p.size) * itm
                       + (vecs.size + b3_p.size) * 4
                       + B_pad * G_pad * 4,
    )

    out = pl.pallas_call(
        mlp_model_kernel,
        out_shape=jax.ShapeDtypeStruct((B_pad, G_pad), jnp.float32),
        grid_spec=pltpu.PrefetchScalarGridSpec(
            num_scalar_prefetch=0,
            grid=grid,
            in_specs=[
                pl.BlockSpec((TB, D_pad), lambda i, j: (i, 0)),  # x: batch-tiled
                pl.BlockSpec((D_pad, H), lambda i, j: (0, 0)),   # w1: VMEM-resident
                pl.BlockSpec((H, H), lambda i, j: (0, 0)),       # w2: VMEM-resident
                pl.BlockSpec((8, H), lambda i, j: (0, 0)),       # packed b/gamma/beta vectors
                pl.BlockSpec((H, TG), lambda i, j: (0, j)),      # w3: tiled over nb_gos
                pl.BlockSpec((1, TG), lambda i, j: (0, j)),      # b3: tiled over nb_gos
            ],
            out_specs=pl.BlockSpec((TB, TG), lambda i, j: (i, j)),
            scratch_shapes=[pltpu.VMEM((TB, H), jnp.float32)],   # shared-trunk cache
        ),
        compiler_params=pltpu.CompilerParams(
            dimension_semantics=("parallel", "arbitrary")),
        cost_estimate=cost,
    )(x_p, w1, w2, vecs, w3_p, b3_p)

    return out[:B, :G]


def init_params(key, input_length, hidden, nb_gos):
    """Deterministic init mimicking PyTorch nn.Linear defaults."""
    ks = jax.random.split(key, 6)

    def linear(kw, kb, fan_in, fan_out):
        bound = 1.0 / math.sqrt(fan_in)
        w = jax.random.uniform(kw, (fan_in, fan_out), jnp.float32, -bound, bound)  # stored as W^T
        b = jax.random.uniform(kb, (1, fan_out), jnp.float32, -bound, bound)
        return w, b

    w1t, b1 = linear(ks[0], ks[1], input_length, hidden)
    w2t, b2 = linear(ks[2], ks[3], hidden, hidden)
    w3t, b3 = linear(ks[4], ks[5], hidden, nb_gos)

    return {
        "w1t": w1t, "b1": b1,
        "g1": jnp.ones((1, hidden), jnp.float32), "be1": jnp.zeros((1, hidden), jnp.float32),
        "w2t": w2t, "b2": b2,
        "g2": jnp.ones((1, hidden), jnp.float32), "be2": jnp.zeros((1, hidden), jnp.float32),
        "w3t": w3t, "b3": b3,
    }


if __name__ == "__main__":
    # Small shapes consistent with the module; B=200 exercises batch tiling
    # (pads to 256 -> two 128-row tiles), D_IN=32 exercises lane padding of the
    # input (-> 128), G=16 exercises lane padding of the output (-> 128).
    B, D_IN, HIDDEN, NB_GOS = 200, 32, 128, 16

    key = jax.random.PRNGKey(0)
    k_x, k_p = jax.random.split(key)
    x = jax.random.normal(k_x, (B, D_IN), jnp.float32)
    params = init_params(k_p, D_IN, HIDDEN, NB_GOS)

    out = mlp_model_forward(x, params)
    out = jax.block_until_ready(out)

    # Pure-JAX reference check of the fused kernel.
    def ref(x, p):
        h = jnp.maximum(x @ p["w1t"] + p["b1"], 0.0)
        mu = h.mean(-1, keepdims=True); var = ((h - mu) ** 2).mean(-1, keepdims=True)
        h = (h - mu) / jnp.sqrt(var + LN_EPS) * p["g1"] + p["be1"]
        r = jnp.maximum(h @ p["w2t"] + p["b2"], 0.0)
        mu = r.mean(-1, keepdims=True); var = ((r - mu) ** 2).mean(-1, keepdims=True)
        r = (r - mu) / jnp.sqrt(var + LN_EPS) * p["g2"] + p["be2"]
        h = h + r
        return jax.nn.sigmoid(h @ p["w3t"] + p["b3"])

    assert out.shape == (B, NB_GOS)
    assert jnp.allclose(out, ref(x, params), atol=1e-5, rtol=1e-5)
    print("KERNEL_OK")
</pallas_src>

<mosaic_0001>
module attributes {stable_mosaic.version = 11 : i64} {
  func.func @mlp_model_kernel(%arg0: i32, %arg1: i32, %arg2: memref<128x128xf32, #tpu.memory_space<vmem>>, %arg3: memref<128x128xf32, #tpu.memory_space<vmem>>, %arg4: memref<128x128xf32, #tpu.memory_space<vmem>>, %arg5: memref<8x128xf32, #tpu.memory_space<vmem>>, %arg6: memref<128x128xf32, #tpu.memory_space<vmem>>, %arg7: memref<1x128xf32, #tpu.memory_space<vmem>>, %arg8: memref<128x128xf32, #tpu.memory_space<vmem>>, %arg9: memref<128x128xf32, #tpu.memory_space<vmem>>) attributes {dimension_semantics = [#tpu.dimension_semantics<parallel>, #tpu.dimension_semantics<arbitrary>], iteration_bounds = array<i64: 2, 1>, scalar_prefetch = 0 : i64, scratch_operands = 1 : i64, tpu.core_type = #tpu.core_type<tc>, window_params = [{transform_indices = @transform_0, window_bounds = array<i64: 128, 128>}, {pipeline_mode = #tpu.pipeline_mode<synchronous>, transform_indices = @transform_1, window_bounds = array<i64: 128, 128>}, {pipeline_mode = #tpu.pipeline_mode<synchronous>, transform_indices = @transform_2, window_bounds = array<i64: 128, 128>}, {pipeline_mode = #tpu.pipeline_mode<synchronous>, transform_indices = @transform_3, window_bounds = array<i64: 8, 128>}, {transform_indices = @transform_4, window_bounds = array<i64: 128, 128>}, {transform_indices = @transform_5, window_bounds = array<i64: 1, 128>}, {transform_indices = @transform_6, window_bounds = array<i64: 128, 128>}]} {
    %c0_i32 = arith.constant 0 : i32
    %0 = arith.cmpi eq, %arg1, %c0_i32 : i32
    %1 = arith.extui %0 : i1 to i32
    %c0_i32_0 = arith.constant 0 : i32
    %2 = arith.cmpi ne, %1, %c0_i32_0 : i32
    scf.if %2 {
      %c0_9 = arith.constant 0 : index
      %c0_10 = arith.constant 0 : index
      %15 = vector.load %arg2[%c0_9, %c0_10] : memref<128x128xf32, #tpu.memory_space<vmem>>, vector<128x128xf32>
      %c0_11 = arith.constant 0 : index
      %c0_12 = arith.constant 0 : index
      %16 = vector.load %arg5[%c0_11, %c0_12] : memref<8x128xf32, #tpu.memory_space<vmem>>, vector<1x128xf32>
      %c1 = arith.constant 1 : index
      %c0_13 = arith.constant 0 : index
      %17 = vector.load %arg5[%c1, %c0_13] : memref<8x128xf32, #tpu.memory_space<vmem>>, vector<1x128xf32>
      %c2 = arith.constant 2 : index
      %c0_14 = arith.constant 0 : index
      %18 = vector.load %arg5[%c2, %c0_14] : memref<8x128xf32, #tpu.memory_space<vmem>>, vector<1x128xf32>
      %c3 = arith.constant 3 : index
      %c0_15 = arith.constant 0 : index
      %19 = vector.load %arg5[%c3, %c0_15] : memref<8x128xf32, #tpu.memory_space<vmem>>, vector<1x128xf32>
      %c4 = arith.constant 4 : index
      %c0_16 = arith.constant 0 : index
      %20 = vector.load %arg5[%c4, %c0_16] : memref<8x128xf32, #tpu.memory_space<vmem>>, vector<1x128xf32>
      %c5 = arith.constant 5 : index
      %c0_17 = arith.constant 0 : index
      %21 = vector.load %arg5[%c5, %c0_17] : memref<8x128xf32, #tpu.memory_space<vmem>>, vector<1x128xf32>
      %c0_18 = arith.constant 0 : index
      %c0_19 = arith.constant 0 : index
      %22 = vector.load %arg3[%c0_18, %c0_19] : memref<128x128xf32, #tpu.memory_space<vmem>>, vector<128x128xf32>
      %cst_20 = arith.constant dense<0.000000e+00> : vector<128x128xf32>
      %23 = tpu.matmul %15, %22, %cst_20 {dimension_numbers = #tpu.dot_dimension_numbers<[1], [0], [0], [1], [0, 0, 1, 1], [], []>} : vector<128x128xf32>, vector<128x128xf32>, vector<128x128xf32> -> vector<128x128xf32>
      %24 = vector.broadcast %16 : vector<1x128xf32> to vector<128x128xf32>
      %25 = arith.addf %23, %24 : vector<128x128xf32>
      %cst_21 = arith.constant 0.000000e+00 : f32
      %26 = vector.broadcast %cst_21 : f32 to vector<128x128xf32>
      %27 = arith.maximumf %25, %26 : vector<128x128xf32>
      %cst_22 = arith.constant dense<0.000000e+00> : vector<128xf32>
      %28 = vector.multi_reduction <add>, %27, %cst_22 [1] : vector<128x128xf32> to vector<128xf32>
      %29 = vector.shape_cast %28 : vector<128xf32> to vector<128x1xf32>
      %cst_23 = arith.constant 1.280000e+02 : f32
      %30 = vector.broadcast %cst_23 : f32 to vector<128x1xf32>
      %31 = arith.divf %29, %30 : vector<128x1xf32>
      %32 = vector.broadcast %31 : vector<128x1xf32> to vector<128x128xf32>
      %33 = arith.subf %27, %32 : vector<128x128xf32>
      %34 = arith.mulf %33, %33 : vector<128x128xf32>
      %cst_24 = arith.constant dense<0.000000e+00> : vector<128xf32>
      %35 = vector.multi_reduction <add>, %34, %cst_24 [1] : vector<128x128xf32> to vector<128xf32>
      %36 = vector.shape_cast %35 : vector<128xf32> to vector<128x1xf32>
      %cst_25 = arith.constant 1.280000e+02 : f32
      %37 = vector.broadcast %cst_25 : f32 to vector<128x1xf32>
      %38 = arith.divf %36, %37 : vector<128x1xf32>
      %cst_26 = arith.constant 9.99999974E-6 : f32
      %39 = vector.broadcast %cst_26 : f32 to vector<128x1xf32>
      %40 = arith.addf %38, %39 : vector<128x1xf32>
      %41 = math.rsqrt %40 : vector<128x1xf32>
      %42 = vector.broadcast %41 : vector<128x1xf32> to vector<128x128xf32>
      %43 = arith.mulf %33, %42 : vector<128x128xf32>
      %44 = vector.broadcast %17 : vector<1x128xf32> to vector<128x128xf32>
      %45 = arith.mulf %43, %44 : vector<128x128xf32>
      %46 = vector.broadcast %18 : vector<1x128xf32> to vector<128x128xf32>
      %47 = arith.addf %45, %46 : vector<128x128xf32>
      %c0_27 = arith.constant 0 : index
      %c0_28 = arith.constant 0 : index
      %48 = vector.load %arg4[%c0_27, %c0_28] : memref<128x128xf32, #tpu.memory_space<vmem>>, vector<128x128xf32>
      %cst_29 = arith.constant dense<0.000000e+00> : vector<128x128xf32>
      %49 = tpu.matmul %47, %48, %cst_29 {dimension_numbers = #tpu.dot_dimension_numbers<[1], [0], [0], [1], [0, 0, 1, 1], [], []>} : vector<128x128xf32>, vector<128x128xf32>, vector<128x128xf32> -> vector<128x128xf32>
      %50 = vector.broadcast %19 : vector<1x128xf32> to vector<128x128xf32>
      %51 = arith.addf %49, %50 : vector<128x128xf32>
      %cst_30 = arith.constant 0.000000e+00 : f32
      %52 = vector.broadcast %cst_30 : f32 to vector<128x128xf32>
      %53 = arith.maximumf %51, %52 : vector<128x128xf32>
      %cst_31 = arith.constant dense<0.000000e+00> : vector<128xf32>
      %54 = vector.multi_reduction <add>, %53, %cst_31 [1] : vector<128x128xf32> to vector<128xf32>
      %55 = vector.shape_cast %54 : vector<128xf32> to vector<128x1xf32>
      %cst_32 = arith.constant 1.280000e+02 : f32
      %56 = vector.broadcast %cst_32 : f32 to vector<128x1xf32>
      %57 = arith.divf %55, %56 : vector<128x1xf32>
      %58 = vector.broadcast %57 : vector<128x1xf32> to vector<128x128xf32>
      %59 = arith.subf %53, %58 : vector<128x128xf32>
      %60 = arith.mulf %59, %59 : vector<128x128xf32>
      %cst_33 = arith.constant dense<0.000000e+00> : vector<128xf32>
      %61 = vector.multi_reduction <add>, %60, %cst_33 [1] : vector<128x128xf32> to vector<128xf32>
      %62 = vector.shape_cast %61 : vector<128xf32> to vector<128x1xf32>
      %cst_34 = arith.constant 1.280000e+02 : f32
      %63 = vector.broadcast %cst_34 : f32 to vector<128x1xf32>
      %64 = arith.divf %62, %63 : vector<128x1xf32>
      %cst_35 = arith.constant 9.99999974E-6 : f32
      %65 = vector.broadcast %cst_35 : f32 to vector<128x1xf32>
      %66 = arith.addf %64, %65 : vector<128x1xf32>
      %67 = math.rsqrt %66 : vector<128x1xf32>
      %68 = vector.broadcast %67 : vector<128x1xf32> to vector<128x128xf32>
      %69 = arith.mulf %59, %68 : vector<128x128xf32>
      %70 = vector.broadcast %20 : vector<1x128xf32> to vector<128x128xf32>
      %71 = arith.mulf %69, %70 : vector<128x128xf32>
      %72 = vector.broadcast %21 : vector<1x128xf32> to vector<128x128xf32>
      %73 = arith.addf %71, %72 : vector<128x128xf32>
      %74 = arith.addf %47, %73 : vector<128x128xf32>
      %c0_36 = arith.constant 0 : index
      %c0_37 = arith.constant 0 : index
      %75 = vector.load %arg9[%c0_36, %c0_37] : memref<128x128xf32, #tpu.memory_space<vmem>>, vector<128x128xf32>
      tpu.vector_store %arg9[%c0_36, %c0_37], %74 {strides = array<i32>} : memref<128x128xf32, #tpu.memory_space<vmem>>, vector<128x128xf32>,
    } else {
    }
    %c0 = arith.constant 0 : index
    %c0_1 = arith.constant 0 : index
    %3 = vector.load %arg9[%c0, %c0_1] : memref<128x128xf32, #tpu.memory_space<vmem>>, vector<128x128xf32>
    %c0_2 = arith.constant 0 : index
    %c0_3 = arith.constant 0 : index
    %4 = vector.load %arg6[%c0_2, %c0_3] : memref<128x128xf32, #tpu.memory_space<vmem>>, vector<128x128xf32>
    %cst = arith.constant dense<0.000000e+00> : vector<128x128xf32>
    %5 = tpu.matmul %3, %4, %cst {dimension_numbers = #tpu.dot_dimension_numbers<[1], [0], [0], [1], [0, 0, 1, 1], [], []>} : vector<128x128xf32>, vector<128x128xf32>, vector<128x128xf32> -> vector<128x128xf32>
    %c0_4 = arith.constant 0 : index
    %c0_5 = arith.constant 0 : index
    %6 = vector.load %arg7[%c0_4, %c0_5] : memref<1x128xf32, #tpu.memory_space<vmem>>, vector<1x128xf32>
    %7 = vector.broadcast %6 : vector<1x128xf32> to vector<128x128xf32>
    %8 = arith.addf %5, %7 : vector<128x128xf32>
    %9 = arith.negf %8 : vector<128x128xf32>
    %10 = math.exp %9 : vector<128x128xf32>
    %cst_6 = arith.constant 1.000000e+00 : f32
    %11 = vector.broadcast %cst_6 : f32 to vector<128x128xf32>
    %12 = arith.addf %11, %10 : vector<128x128xf32>
    %13 = arith.divf %11, %12 : vector<128x128xf32>
    %c0_7 = arith.constant 0 : index
    %c0_8 = arith.constant 0 : index
    %14 = vector.load %arg8[%c0_7, %c0_8] : memref<128x128xf32, #tpu.memory_space<vmem>>, vector<128x128xf32>
    tpu.vector_store %arg8[%c0_7, %c0_8], %13 {strides = array<i32>} : memref<128x128xf32, #tpu.memory_space<vmem>>, vector<128x128xf32>,
    return
  }
  func.func @transform_0(%arg0: i32, %arg1: i32) -> (i32, i32) {
    %c0_i32 = arith.constant 0 : i32
    %c0_i32_0 = arith.constant 0 : i32
    return %arg0, %c0_i32 : i32, i32
  }
  func.func @transform_1(%arg0: i32, %arg1: i32) -> (i32, i32) {
    %c0_i32 = arith.constant 0 : i32
    %c0_i32_0 = arith.constant 0 : i32
    %c0_i32_1 = arith.constant 0 : i32
    return %c0_i32, %c0_i32_0 : i32, i32
  }
  func.func @transform_2(%arg0: i32, %arg1: i32) -> (i32, i32) {
    %c0_i32 = arith.constant 0 : i32
    %c0_i32_0 = arith.constant 0 : i32
    %c0_i32_1 = arith.constant 0 : i32
    return %c0_i32, %c0_i32_0 : i32, i32
  }
  func.func @transform_3(%arg0: i32, %arg1: i32) -> (i32, i32) {
    %c0_i32 = arith.constant 0 : i32
    %c0_i32_0 = arith.constant 0 : i32
    %c0_i32_1 = arith.constant 0 : i32
    return %c0_i32, %c0_i32_0 : i32, i32
  }
  func.func @transform_4(%arg0: i32, %arg1: i32) -> (i32, i32) {
    %c0_i32 = arith.constant 0 : i32
    %c0_i32_0 = arith.constant 0 : i32
    return %c0_i32, %arg1 : i32, i32
  }
  func.func @transform_5(%arg0: i32, %arg1: i32) -> (i32, i32) {
    %c0_i32 = arith.constant 0 : i32
    %c0_i32_0 = arith.constant 0 : i32
    return %c0_i32, %arg1 : i32, i32
  }
  func.func @transform_6(%arg0: i32, %arg1: i32) -> (i32, i32) {
    %c0_i32 = arith.constant 0 : i32
    return %arg0, %arg1 : i32, i32
  }
}

</mosaic_0001>

<bundles_post_ra>
// kernel: tpu_custom_call.1
= control target key start
LH: loop header
LB: loop body
LE: loop exit
PB: predicated region body
PF: predicated region fallthrough
CT: control target
= control target key end

     0   :  { %s3431_s0 = inlined_call_operand.hbm [shape: f32[256,128], index: 0, kind: input, shape index: {}]   ;;  %s3432_s1 = inlined_call_operand.hbm [shape: f32[128,128], index: 1, kind: input, shape index: {}]   ;;  %s3433_s2 = inlined_call_operand.hbm [shape: f32[128,128], index: 2, kind: input, shape index: {}]   ;;  %s3434_s3 = inlined_call_operand.vmem [shape: f32[8,128], index: 3, kind: input, shape index: {}]   ;;  %s3435_s4 = inlined_call_operand.hbm [shape: f32[128,128], index: 4, kind: input, shape index: {}]   ;;  %s3436_s5 = inlined_call_operand.vmem [shape: f32[1,128], index: 5, kind: input, shape index: {}]   ;;  %s3437_s6 = inlined_call_operand.hbm [shape: f32[256,128], index: 6, kind: output, shape index: {}]  }
   0x1   :  { %3445 = sst [smem:[#allocation18_spill]] %s3437_s6 }
   0x2   :  { %11 = vsyncpa [#allocation4], 0 }
   0x3   :  { %13 = vsyncpa [#allocation4 + $0x1], 0 }
   0x4   :  { %14 = vsyncpa [#allocation7], 0 }
   0x5   :  { %15 = vsyncpa [#allocation10], 0 }
   0x6   :  { %16 = vsyncpa [#allocation5], 0 }
   0x7   :  { %18 = vsyncpa [#allocation5 + $0x1], 0  ;;  %s2539_s21 = smov 0   ;;  %s2541_s22 = smov 0  }
   0x8   :  { %s2543_s23 = smov 0   ;;  %s2545_s24 = smov 0  }
   0x9   :  { %s2547_s25 = smov 0   ;;  %s2549_s26 = smov 0  }
   0xa LB: > { %3446 = sst [smem:[#allocation16_spill]] %s2473_s21  ;;  %s1641_s27 = sadd.s32 4294967295, %s2493_s26   ;;  %s2493_s26 = sphi %s2549_s26, %s24_s26   ;;  %s2489_s25 = sphi %s2547_s25, %s3470_s25   ;;  %s2485_s24 = sphi %s2545_s24, %s3469_s24   ;;  %s2481_s23 = sphi %s2543_s23, %s3468_s23   ;;  %s2477_s22 = sphi %s2541_s22, %s3467_s22   ;;  %s2473_s21 = sphi %s2539_s21, %s3466_s21  }
   0xb   : > { %s1642_s28 = sadd.s32 4294967294, %s2493_s26   ;;  %p56_p0 = scmp.ne.s32.totalorder %s2477_s22, %s2473_s21 }
   0xc   : > { %p2573_p1 = scmp.eq.s32.totalorder %s1641_s27, 0  ;;  %p2577_p2 = scmp.eq.s32.totalorder %s1641_s27, 1 }
   0xd   : > { %p203_p3 = scmp.eq.s32.totalorder %s1642_s28, 1  ;;  %p1643_p5 = scmp.ge.s32.totalorder %s2493_s26, 1 }
   0xe   : > { %s3447_s29 = scalar_select %p2573_p1, 1, 0 }
   0xf   : > { %s3448_s30 = scalar_select %p2577_p2, 1, 0 }
  0x10   : > { %p2583_p4 = por %p2573_p1, %p56_p0  ;;  %p2588_p6 = por %p203_p3, %p56_p0 }
  0x11   : > { %p210_p7 = scmp.lt.s32.totalorder %s2493_s26, 3  ;;  %s2495_s10 = smov [#allocation6]  }
  0x12   : > { %s3449_s7 = scalar_select %p2583_p4, 1, 0 }
  0x13   : > { %s3450_s8 = scalar_select %p2588_p6, 1, 0 }
  0x14   : > { %p2593_p8 = pnand %p1643_p5, %p210_p7  ;;  %s222_s11 = sshll.u32 %s2495_s10, 4  ;;  %s2597_s11 = int_to_ptr.vmem [resolvable:$true] %s222_s11 }
  0x15   : > { %3451 = sst [smem:[#allocation17_spill]] %s3450_s8  ;;  %s2496_s13 = smov [#allocation8]  }
  0x16   : > { %s3452_s9 = scalar_select %p2593_p8, 1, 0 }
  0x17   : > { %p2080_p9 = pneg %p2593_p8  ;;  %s235_s14 = sshll.u32 %s2496_s13, 4  ;;  %s2608_s14 = int_to_ptr.vmem [resolvable:$true] %s235_s14 }
  0x18   : > { %s2497_s15 = smov [#allocation9]   ;;  %s2289_s19 = scalar_lea.hbm %s3432_s1, 2048 }
  0x19   : > { %p2604_p11 = pnand %p2080_p9, %p2573_p1  ;;  %s2610_s16 = sshll.u32 %s2497_s15, 4  ;;  %s254_s16 = int_to_ptr.vmem [resolvable:$true] %s2610_s16 }
  0x1a   : > { %p2290_p12 = scmp.ne.s32.totalorder %s3432_s1, %s2289_s19  ;;  %p2296_p5 = scmp.lt.u32.totalorder %s2289_s19, %s3432_s1 }
  0x1b   : > { %p2620_p13 = pneg %p2604_p11 }
  0x1d   : > { %p2292_p0 = pnand %p2620_p13, %p2290_p12 }
  0x1f   : > { %p2293_p3 = pneg %p2292_p0 }
  0x21   : > { %p2298_p7 = pnand %p2296_p5, %p2293_p3 }
  0x23   : > { %2301 = shalt.err (!%p2298_p7)
}
  0x24   : > { %s2302_s15 = scalar_lea.vmem %s2597_s11, 2048  ;;  %p2310_p1 = scmp.lt.s32.totalorder %s2597_s11, %s2597_s11 }
  0x25   : > { %p2303_p9 = scmp.ne.s32.totalorder %s2597_s11, %s2302_s15  ;;  %p2311_p4 = scmp.lt.s32.totalorder %s2302_s15, %s2302_s15 }
  0x27   : > { %p2305_p10 = pnand %p2303_p9, %p2620_p13  ;;  %p2312_p12 = por %p2311_p4, %p2310_p1 }
  0x29   : > { %p2306_p6 = pneg %p2305_p10 }
  0x2b   : > { %p2313_p0 = pnand %p2312_p12, %p2306_p6 }
  0x2d   : > { %2316 = shalt.err (!%p2313_p0)
}
  0x2e   : > { %s2498_s17 = smov 128   ;;  %s2499_s18 = smov 8  }
  0x2f   : > { %2083 = dma.hbm_to_vmem [thread:$0]  (!%p2604_p11), %s3432_s1, 2048, %s2597_s11, [#allocation7], %s2498_s17, %s2498_s17, %s2499_s18  }
  0x30   : > { %s2317_s13 = scalar_lea.hbm %s3433_s2, 2048 }
  0x31   : > { %p2318_p1 = scmp.ne.s32.totalorder %s3433_s2, %s2317_s13  ;;  %p2324_p10 = scmp.lt.u32.totalorder %s2317_s13, %s3433_s2 }
  0x33   : > { %p2320_p4 = pnand %p2318_p1, %p2620_p13 }
  0x35   : > { %p2321_p6 = pneg %p2320_p4 }
  0x37   : > { %p2326_p3 = pnand %p2324_p10, %p2321_p6 }
  0x39   : > { %2329 = shalt.err (!%p2326_p3)
}
  0x3a   : > { %s2330_s11 = scalar_lea.vmem %s2608_s14, 2048  ;;  %p2338_p12 = scmp.lt.s32.totalorder %s2608_s14, %s2608_s14 }
  0x3b   : > { %p2331_p5 = scmp.ne.s32.totalorder %s2608_s14, %s2330_s11  ;;  %p2339_p0 = scmp.lt.s32.totalorder %s2330_s11, %s2330_s11 }
  0x3d   : > { %p2333_p7 = pnand %p2331_p5, %p2620_p13  ;;  %p2340_p1 = por %p2339_p0, %p2338_p12 }
  0x3f   : > { %p2334_p9 = pneg %p2333_p7 }
  0x41   : > { %p2341_p4 = pnand %p2340_p1, %p2334_p9 }
  0x43   : > { %2344 = shalt.err (!%p2341_p4)
}
  0x44   : > { %2086 = dma.hbm_to_vmem [thread:$0]  (!%p2604_p11), %s3433_s2, 2048, %s2608_s14, [#allocation7], %s2498_s17, %s2498_s17, %s2499_s18  }
  0x45   : > { %s2345_s20 = scalar_lea.hbm %s3435_s4, 2048 }
  0x46   : > { %p2346_p6 = scmp.ne.s32.totalorder %s3435_s4, %s2345_s20  ;;  %p2352_p5 = scmp.lt.u32.totalorder %s2345_s20, %s3435_s4 }
  0x48   : > { %p2348_p10 = pnand %p2346_p6, %p2620_p13 }
  0x4a   : > { %p2349_p3 = pneg %p2348_p10 }
  0x4c   : > { %p2354_p7 = pnand %p2352_p5, %p2349_p3 }
  0x4e   : > { %2357 = shalt.err (!%p2354_p7)
}
  0x4f   : > { %s2358_s11 = scalar_lea.vmem %s254_s16, 2048  ;;  %p2366_p1 = scmp.lt.s32.totalorder %s254_s16, %s254_s16 }
  0x50   : > { %p2359_p9 = scmp.ne.s32.totalorder %s254_s16, %s2358_s11  ;;  %p2367_p4 = scmp.lt.s32.totalorder %s2358_s11, %s2358_s11 }
  0x52   : > { %p2361_p12 = pnand %p2359_p9, %p2620_p13  ;;  %p2368_p8 = por %p2367_p4, %p2366_p1 }
  0x54   : > { %p2362_p0 = pneg %p2361_p12 }
  0x56   : > { %p2369_p2 = pnand %p2368_p8, %p2362_p0 }
  0x58   : > { %2372 = shalt.err (!%p2369_p2)
}
  0x59   : > { %2089 = dma.hbm_to_vmem [thread:$0]  (!%p2604_p11), %s3435_s4, 2048, %s254_s16, [#allocation10], %s2498_s17, %s2498_s17, %s2499_s18  }
  0x5a   : > { %s43_s28 = sadd.s32 1, %s2481_s23  ;;  %s36_s12 = sadd.s32 1, %s2489_s25 }
  0x5b   : > { %p50_p2 = scmp.ne.s32.totalorder %s2481_s23, %s2477_s22  ;;  %p38_p8 = scmp.ge.s32.totalorder %s36_s12, 2 }
  0x5c   : > { %p51_p13 = scmp.eq.s32.totalorder %s2493_s26, 0  ;;  %p3455_p6 = scmp.ne.s32.totalorder %s3448_s30, 0 }
  0x5d   : > { %p2101_p3 = scmp.lt.s32.totalorder %s2493_s26, 2  ;;  %s3472_s12 = smov (%p38_p8, %s36_s12), 0 }
  0x5e   : > { %p2699_p10 = por %p3455_p6, %p50_p2  ;;  %p52_p5 = por %p51_p13, %p50_p2 }
  0x5f   : > { %s273_s8 = sand.u32 1, %s2481_s23   ;;  %s40_s19 = ssub.s32 %s2489_s25, %s3472_s12 }
  0x60   : > { %p41_p7 = scmp.eq.s32.totalorder %s40_s19, 0  ;;  %s1649_s16 = sshll.u32 %s273_s8, 7 }
  0x61   : > { %s1686_s20 = sshll.u32 %s2489_s25, 11  ;;  %s277_s15 = scalar_lea.vmem [#allocation3], %s1649_s16 }
  0x62   : > { %s2711_s27 = scalar_select %p41_p7, %s2481_s23, %s43_s28  }
  0x63   : > { %s2716_s30 = scalar_lea.hbm %s3431_s0, %s1686_s20  ;;  %s284_s11 = sshll.u32 %s277_s15, 4  ;;  %s2718_s11 = int_to_ptr.vmem [resolvable:$true] %s284_s11 }
  0x64   : > { %p2722_p11 = pnand %p2101_p3, %p52_p5  ;;  %s2726_s6 = scalar_lea.sflag [#allocation4], %s273_s8 }
  0x65   : > { %s2373_s28 = scalar_lea.hbm %s2716_s30, 2048  ;;  %s2378_s20 = scalar_lea.hbm %s3431_s0, 4096 }
  0x66   : > { %p2374_p9 = scmp.ne.s32.totalorder %s2716_s30, %s2373_s28  ;;  %p2375_p12 = pneg %p2722_p11 }
  0x67   : > { %p2379_p4 = scmp.lt.u32.totalorder %s2716_s30, %s3431_s0  ;;  %p2380_p2 = scmp.lt.u32.totalorder %s2378_s20, %s2373_s28 }
  0x68   : > { %p2376_p0 = pnand %p2375_p12, %p2374_p9  ;;  %p2382_p13 = scmp.lt.u32.totalorder %s2373_s28, %s2716_s30 }
  0x69   : > { %p2381_p8 = por %p2380_p2, %p2379_p4 }
  0x6a   : > { %p2377_p1 = pneg %p2376_p0 }
  0x6b   : > { %p2383_p6 = por %p2382_p13, %p2381_p8 }
  0x6d   : > { %p2384_p3 = pnand %p2383_p6, %p2377_p1 }
  0x6f   : > { %2387 = shalt.err (!%p2384_p3)
}
  0x70   : > { %s2388_s8 = scalar_lea.vmem %s2718_s11, 2048  ;;  %s2500_s15 = smov [#allocation3]  }
  0x71   : > { %p2389_p5 = scmp.ne.s32.totalorder %s2718_s11, %s2388_s8  ;;  %s2393_s19 = sshll.u32 %s2500_s15, 4  ;;  %s2394_s19 = int_to_ptr.vmem [resolvable:$false] %s2393_s19 }
  0x72   : > { %s2395_s16 = scalar_lea.vmem %s2394_s19, 4096  ;;  %p2396_p0 = scmp.lt.s32.totalorder %s2718_s11, %s2394_s19 }
  0x73   : > { %p2391_p7 = pnand %p2389_p5, %p2375_p12  ;;  %p2397_p4 = scmp.lt.s32.totalorder %s2395_s16, %s2388_s8 }
  0x75   : > { %p2392_p9 = pneg %p2391_p7  ;;  %p2398_p2 = por %p2397_p4, %p2396_p0 }
  0x77   : > { %p2399_p8 = pnand %p2398_p2, %p2392_p9 }
  0x79   : > { %2402 = shalt.err (!%p2399_p8)
}
  0x7a   : > { %2093 = dma.hbm_to_vmem [thread:$0]  (!%p2722_p11), %s2716_s30, 2048, %s2718_s11, %s2726_s6, %s2498_s17, %s2498_s17, %s2499_s18  }
  0x7b   : > { %p3458_p12 = scmp.ne.s32.totalorder %s3452_s9, 0 }
  0x7c   : > { %s2760_s28 = sand.u32 (!%p3458_p12), 1, %s2477_s22   ;;  %p3459_p1 = scmp.ne.s32.totalorder (!%p3458_p12), %s3449_s7, 0 }
  0x7d   : > { %296 = sbr.rel (%p3458_p12) target bundleno = 1536 (0x600), region = 44  ;;  %s1653_s20 = sshll.u32 (!%p3458_p12), %s2760_s28, 7 }
  0x7e   : > { %s299_s10 = scalar_lea.sflag (!%p3458_p12), [#allocation4], %s2760_s28  ;;  %s2766_s14 = scalar_lea.vmem (!%p3458_p12), [#allocation3], %s1653_s20 }
  0x84   : > { %2456 = dma.done.wait (%p3459_p1), %s299_s10, 2048  }
  0x85   : > { %2458 = vsyncadd (%p3459_p1), %s299_s10, 4294965248  ;;  %p3460_p11 = scmp.ne.s32.totalorder %s3447_s29, 0 }
  0x87   : > { %2460 = dma.done.wait (%p3460_p11), [#allocation7], 4096  }
  0x88   : > { %2462 = vsyncadd (%p3460_p11), [#allocation7], 4294963200 }
  0x89   : > { %2464 = dma.done.wait (%p3460_p11), [#allocation10], 2048  }
  0x8a   : > { %2466 = vsyncadd (%p3460_p11), [#allocation10], 4294965248  ;;  %v377_v0 = vld [vmem:[#allocation6] sm:$0xff]  ;;  %v378_v1 = vld [vmem:[#allocation6 + $0x8] sm:$0xff]  ;;  %s3461_s17 = sld [smem:[#allocation18_spill]]  ;;  %s1501_s30 = scalar_lea.sflag [#allocation5], %s2760_s28 }
  0x8b   : > { %v379_v2 = vld [vmem:[#allocation6 + $0x10] sm:$0xff]  ;;  %v1952_v3 = vpack.c.bf16 %v378_v1, %v377_v0  ;;  %v380_v4 = vld [vmem:[#allocation6 + $0x18] sm:$0xff]  ;;  %v381_v6 = vld [vmem:[#allocation6 + $0x20] sm:$0xff] }
  0x8c   : > { %v1956_v5 = vpack.c.bf16 %v380_v4, %v379_v2  ;;  %v382_v7 = vld [vmem:[#allocation6 + $0x28] sm:$0xff]  ;;  %v355_v9 = vld [vmem:[%s2766_s14] sm:$0xff]  ;;  %v383_v10 = vld [vmem:[#allocation6 + $0x30] sm:$0xff] }
  0x8d   : > { %1953 = vmatprep.subr.bf16.mxu0 %v1952_v3  ;;  %v1960_v8 = vpack.c.bf16 %v382_v7, %v381_v6  ;;  %v384_v11 = vld [vmem:[#allocation6 + $0x38] sm:$0xff]  ;;  %1816 = vmatprep.mubr.f32.mxu0 %v355_v9  ;;  %v385_v13 = vld [vmem:[#allocation6 + $0x40] sm:$0xff]  ;;  %v386_v14 = vld [vmem:[#allocation6 + $0x48] sm:$0xff] }
  0x8e   : > { %1955 = vmatpush3.bf16.msra.mxu0 %v1952_v3  ;;  %v1964_v12 = vpack.c.bf16 %v384_v11, %v383_v10  ;;  %v1968_v15 = vpack.c.bf16 %v386_v14, %v385_v13  ;;  %v387_v16 = vld [vmem:[#allocation6 + $0x50] sm:$0xff]  ;;  %v388_v17 = vld [vmem:[#allocation6 + $0x58] sm:$0xff]  ;;  %v389_v19 = vld [vmem:[#allocation6 + $0x60] sm:$0xff] }
  0x8f   : > { %1957 = vmatprep.subr.bf16.mxu0 %v1956_v5  ;;  %v1972_v18 = vpack.c.bf16 %v388_v17, %v387_v16  ;;  %v390_v20 = vld [vmem:[#allocation6 + $0x68] sm:$0xff]  ;;  %v391_v22 = vld [vmem:[#allocation6 + $0x70] sm:$0xff]  ;;  %v392_v23 = vld [vmem:[#allocation6 + $0x78] sm:$0xff] }
  0x90   : > { %v1976_v21 = vpack.c.bf16 %v390_v20, %v389_v19  ;;  %v1980_v24 = vpack.c.bf16 %v392_v23, %v391_v22  ;;  %v356_v25 = vld [vmem:[%s2766_s14 + $0x8] sm:$0xff]  ;;  %v357_v26 = vld [vmem:[%s2766_s14 + $0x10] sm:$0xff]  ;;  %v358_v27 = vld [vmem:[%s2766_s14 + $0x18] sm:$0xff] }
  0x91   : > { %v359_v28 = vld [vmem:[%s2766_s14 + $0x20] sm:$0xff]  ;;  %v360_v29 = vld [vmem:[%s2766_s14 + $0x28] sm:$0xff]  ;;  %v361_v30 = vld [vmem:[%s2766_s14 + $0x30] sm:$0xff] }
  0x92   : > { %1959 = vmatpush3.bf16.msra.mxu0 %v1956_v5  ;;  %v362_v31 = vld [vmem:[%s2766_s14 + $0x38] sm:$0xff]  ;;  %v363_v32 = vld [vmem:[%s2766_s14 + $0x40] sm:$0xff]  ;;  %v364_v33 = vld [vmem:[%s2766_s14 + $0x48] sm:$0xff] }
  0x93   : > { %1961 = vmatprep.subr.bf16.mxu0 %v1960_v8  ;;  %v365_v34 = vld [vmem:[%s2766_s14 + $0x50] sm:$0xff]  ;;  %v366_v35 = vld [vmem:[%s2766_s14 + $0x58] sm:$0xff]  ;;  %v367_v36 = vld [vmem:[%s2766_s14 + $0x60] sm:$0xff] }
  0x94   : > { %v368_v37 = vld [vmem:[%s2766_s14 + $0x68] sm:$0xff]  ;;  %v369_v38 = vld [vmem:[%s2766_s14 + $0x70] sm:$0xff]  ;;  %v370_v39 = vld [vmem:[%s2766_s14 + $0x78] sm:$0xff]  ;;  %s3353_s14 = scalar_lea.vmem [#allocation11], %s1653_s20  ;;  %s1687_s20 = sshll.u32 %s2485_s24, 11 }
  0x95   : > { %v1658_v40 = vld [vmem:[%s3434_s3] ss:$0 sm:$0xff]  ;;  %s1515_s29 = sshll.u32 %s3353_s14, 4  ;;  %s3378_s18 = scalar_lea.hbm %s3461_s17, %s1687_s20  ;;  %s3380_s29 = int_to_ptr.vmem [resolvable:$true] %s1515_s29 }
  0x96   : > { %1963 = vmatpush3.bf16.msra.mxu0 %v1960_v8  ;;  %s2403_s11 = scalar_lea.vmem %s3380_s29, 2048  ;;  %s2501_s24 = smov [#allocation11]  }
  0x97   : > { %1965 = vmatprep.subr.bf16.mxu0 %v1964_v12  ;;  %p2404_p13 = scmp.ne.s32.totalorder %s3380_s29, %s2403_s11  ;;  %s2407_s6 = sshll.u32 %s2501_s24, 4  ;;  %s2408_s6 = int_to_ptr.vmem [resolvable:$false] %s2407_s6 }
  0x98   : > { %s2409_s13 = scalar_lea.vmem %s2408_s6, 4096  ;;  %p2410_p5 = scmp.lt.s32.totalorder %s3380_s29, %s2408_s6 }
  0x99   : > { %p2405_p6 = pnand %p2404_p13, %p2699_p10  ;;  %p2411_p7 = scmp.lt.s32.totalorder %s2409_s13, %s2403_s11 }
  0x9a   : > { %1967 = vmatpush3.bf16.msra.mxu0 %v1964_v12 }
  0x9b   : > { %1969 = vmatprep.subr.bf16.mxu0 %v1968_v15  ;;  %p2406_p3 = pneg %p2405_p6  ;;  %p2412_p9 = por %p2411_p7, %p2410_p5 }
  0x9d   : > { %p2413_p0 = pnand %p2412_p9, %p2406_p3 }
  0x9e   : > { %1971 = vmatpush3.bf16.msra.mxu0 %v1968_v15 }
  0x9f   : > { %1973 = vmatprep.subr.bf16.mxu0 %v1972_v18 }
  0xa2   : > { %1975 = vmatpush3.bf16.msra.mxu0 %v1972_v18 }
  0xa3   : > { %1977 = vmatprep.subr.bf16.mxu0 %v1976_v21 }
  0xa6   : > { %1979 = vmatpush3.bf16.msra.mxu0 %v1976_v21 }
  0xa7   : > { %1981 = vmatprep.subr.bf16.mxu0 %v1980_v24 }
  0xaa   : > { %1983 = vmatpush3.bf16.msra.mxu0 %v1980_v24 }
  0xad   : > { %1817 = vmatmul.mubr.f32.vlgmr.msra.gmra.mrb[0].mxu0 %v356_v25  ;;  %v775_v25 = vld [vmem:[#allocation8] sm:$0xff] }
  0xae   : > { %1819 = vmatprep.mubr.f32.mxu0 %v357_v26  ;;  %v776_v26 = vld [vmem:[#allocation8 + $0x8] sm:$0xff] }
  0xb1   : > { %1820 = vmatmul.mubr.f32.gmra.mrb[2].mxu0 %v358_v27  ;;  %v777_v27 = vld [vmem:[#allocation8 + $0x10] sm:$0xff] }
  0xb2   : > { %1822 = vmatprep.mubr.f32.mxu0 %v359_v28  ;;  %v1984_v28 = vpack.c.bf16 %v776_v26, %v775_v25 }
  0xb4   : > { %1985 = vmatprep.subr.bf16.mxu1 %v1984_v28 }
  0xb5   : > { %1823 = vmatmul.mubr.f32.gmra.mrb[4].mxu0 %v360_v29  ;;  %v778_v29 = vld [vmem:[#allocation8 + $0x18] sm:$0xff]  ;;  %1987 = vmatpush3.bf16.msra.mxu1 %v1984_v28  ;;  %v781_v28 = vld [vmem:[#allocation8 + $0x30] sm:$0xff] }
  0xb6   : > { %1825 = vmatprep.mubr.f32.mxu0 %v361_v30  ;;  %v1988_v30 = vpack.c.bf16 %v778_v29, %v777_v27  ;;  %v782_v29 = vld [vmem:[#allocation8 + $0x38] sm:$0xff] }
  0xb8   : > { %1989 = vmatprep.subr.bf16.mxu1 %v1988_v30 }
  0xb9   : > { %1826 = vmatmul.mubr.f32.gmra.mrb[6].mxu0 %v362_v31  ;;  %1991 = vmatpush3.bf16.msra.mxu1 %v1988_v30 }
  0xba   : > { %1828 = vmatprep.mubr.f32.mxu0 %v363_v32 }
  0xbd   : > { %1829 = vmatmul.mubr.f32.gmra.mrb[8].mxu0 %v364_v33 }
  0xbe   : > { %1831 = vmatprep.mubr.f32.mxu0 %v365_v34 }
  0xc1   : > { %1832 = vmatmul.mubr.f32.gmra.mrb[10].mxu0 %v366_v35 }
  0xc2   : > { %1834 = vmatprep.mubr.f32.mxu0 %v367_v36 }
  0xc5   : > { %1835 = vmatmul.mubr.f32.gmra.mrb[12].mxu0 %v368_v37 }
  0xc6   : > { %1837 = vmatprep.mubr.f32.mxu0 %v369_v38 }
  0xc9   : > { %1838 = vmatmul.mubr.f32.gmra.mrb[14].mxu0 %v370_v39 }
 0x180   : > { %v1818_v41 = vpop.f32.mrb[0].mxu0 }
 0x181   : > { %v463_v42 = vpop.f32.mrb[1].mxu0  ;;  %v2801_v44 = vadd.f32 %v1818_v41, %v1658_v40 }
 0x182   : > { %v2799_v43 = vadd.f32 %v1658_v40, %v463_v42 }
 0x183   : > { %v543_v49 = vmax.f32 %v2801_v44, 0.0 }
 0x184   : > { %v542_v45 = vmax.f32 %v2799_v43, 0.0  ;;  %v1821_v46 = vpop.f32.mrb[2].mxu0 }
 0x185   : > { %v473_v47 = vpop.f32.mrb[3].mxu0  ;;  %v2809_v50 = vadd.f32 %v1821_v46, %v1658_v40 }
 0x186   : > { %v2804_v48 = vadd.f32 %v1658_v40, %v473_v47  ;;  %558 = vadd.xlane.f32.xlu0 %v542_v45 }
 0x187   : > { %v545_v55 = vmax.f32 %v2809_v50, 0.0 }
 0x188   : > { %v544_v51 = vmax.f32 %v2804_v48, 0.0  ;;  %v1824_v52 = vpop.f32.mrb[4].mxu0 }
 0x189   : > { %v483_v53 = vpop.f32.mrb[5].mxu0  ;;  %v2819_v56 = vadd.f32 %v1824_v52, %v1658_v40 }
 0x18a   : > { %v2812_v54 = vadd.f32 %v1658_v40, %v483_v53  ;;  %562 = vadd.xlane.f32.xlu1 %v544_v51  ;;  %560 = vadd.xlane.f32.xlu0 %v543_v49 }
 0x18b   : > { %v547_v61 = vmax.f32 %v2819_v56, 0.0 }
 0x18c   : > { %v546_v57 = vmax.f32 %v2812_v54, 0.0  ;;  %v1827_v58 = vpop.f32.mrb[6].mxu0 }
 0x18d   : > { %v493_v59 = vpop.f32.mrb[7].mxu0  ;;  %v2829_v62 = vadd.f32 %v1827_v58, %v1658_v40 }
 0x18e   : > { %v2822_v60 = vadd.f32 %v1658_v40, %v493_v59  ;;  %564 = vadd.xlane.f32.xlu1 %v545_v55  ;;  %566 = vadd.xlane.f32.xlu0 %v546_v57 }
 0x18f   : > { %v549_v3 = vmax.f32 %v2829_v62, 0.0 }
 0x190   : > { %v548_v63 = vmax.f32 %v2822_v60, 0.0  ;;  %v1830_v0 = vpop.f32.mrb[8].mxu0 }
 0x191   : > { %v503_v1 = vpop.f32.mrb[9].mxu0  ;;  %v2839_v4 = vadd.f32 %v1830_v0, %v1658_v40 }
 0x192   : > { %v2832_v2 = vadd.f32 %v1658_v40, %v503_v1  ;;  %568 = vadd.xlane.f32.xlu1 %v547_v61  ;;  %570 = vadd.xlane.f32.xlu0 %v548_v63 }
 0x193   : > { %v551_v10 = vmax.f32 %v2839_v4, 0.0 }
 0x194   : > { %v550_v5 = vmax.f32 %v2832_v2, 0.0  ;;  %v1833_v6 = vpop.f32.mrb[10].mxu0 }
 0x195   : > { %v513_v7 = vpop.f32.mrb[11].mxu0  ;;  %v2842_v8 = vadd.f32 %v1833_v6, %v1658_v40 }
 0x196   : > { %v2844_v9 = vadd.f32 %v1658_v40, %v513_v7  ;;  %572 = vadd.xlane.f32.xlu1 %v549_v3  ;;  %574 = vadd.xlane.f32.xlu0 %v550_v5 }
 0x197   : > { %v553_v14 = vmax.f32 %v2842_v8, 0.0 }
 0x198   : > { %v552_v11 = vmax.f32 %v2844_v9, 0.0  ;;  %v1836_v12 = vpop.f32.mrb[12].mxu0 }
 0x199   : > { %v523_v13 = vpop.f32.mrb[13].mxu0  ;;  %v2853_v15 = vadd.f32 %v1836_v12, %v1658_v40 }
 0x19a   : > { %v2855_v16 = vadd.f32 %v1658_v40, %v523_v13  ;;  %576 = vadd.xlane.f32.xlu1 %v551_v10  ;;  %578 = vadd.xlane.f32.xlu0 %v552_v11 }
 0x19b   : > { %v555_v20 = vmax.f32 %v2853_v15, 0.0 }
 0x19c   : > { %v554_v17 = vmax.f32 %v2855_v16, 0.0  ;;  %v1839_v18 = vpop.f32.mrb[14].mxu0 }
 0x19d   : > { %v533_v19 = vpop.f32.mrb[15].mxu0  ;;  %v2863_v21 = vadd.f32 %v1839_v18, %v1658_v40 }
 0x19e   : > { %v2865_v22 = vadd.f32 %v1658_v40, %v533_v19  ;;  %580 = vadd.xlane.f32.xlu1 %v553_v14  ;;  %582 = vadd.xlane.f32.xlu0 %v554_v17 }
 0x19f   : > { %v557_v24 = vmax.f32 %v2863_v21, 0.0 }
 0x1a0   : > { %v556_v23 = vmax.f32 %v2865_v22, 0.0  ;;  %v787_v22 = vld [vmem:[#allocation8 + $0x60] sm:$0xff] }
 0x1a2   : > { %584 = vadd.xlane.f32.xlu1 %v555_v20  ;;  %586 = vadd.xlane.f32.xlu0 %v556_v23 }
 0x1a6   : > { %588 = vadd.xlane.f32.xlu1 %v557_v24 }
 0x213   : > { %v559_v31 = vpop.xlane.xlu0 %558 }
 0x214   : > { %v591_v32 = vmul.f32 0.0078125, %v559_v31 }
 0x216   : > { %v2881_v33 = vsub.f32 %v542_v45, %v591_v32 }
 0x217   : > { %v563_v34 = vpop.xlane.xlu1 %562  ;;  %v561_v35 = vpop.xlane.xlu0 %560 }
 0x218   : > { %v593_v36 = vmul.f32 0.0078125, %v563_v34  ;;  %v592_v37 = vmul.f32 0.0078125, %v561_v35  ;;  %v623_v38 = vmul.f32 %v2881_v33, %v2881_v33 }
 0x21a   : > { %v2887_v39 = vsub.f32 %v544_v51, %v593_v36  ;;  %v2891_v40 = vsub.f32 %v543_v49, %v592_v37  ;;  %639 = vadd.xlane.f32.xlu0 %v623_v38  ;;  %v783_v36 = vld [vmem:[#allocation8 + $0x40] sm:$0xff]  ;;  %v784_v37 = vld [vmem:[#allocation8 + $0x48] sm:$0xff] }
 0x21b   : > { %v565_v41 = vpop.xlane.xlu1 %564  ;;  %v567_v42 = vpop.xlane.xlu0 %566 }
 0x21c   : > { %v594_v43 = vmul.f32 0.0078125, %v565_v41  ;;  %v595_v45 = vmul.f32 0.0078125, %v567_v42  ;;  %v625_v46 = vmul.f32 %v2887_v39, %v2887_v39  ;;  %v624_v47 = vmul.f32 %v2891_v40, %v2891_v40 }
 0x21e   : > { %v2899_v48 = vsub.f32 %v545_v55, %v594_v43  ;;  %v2903_v44 = vsub.f32 %v546_v57, %v595_v45  ;;  %643 = vadd.xlane.f32.xlu0 %v625_v46  ;;  %641 = vadd.xlane.f32.xlu1 %v624_v47  ;;  %v785_v45 = vld [vmem:[#allocation8 + $0x50] sm:$0xff]  ;;  %v786_v46 = vld [vmem:[#allocation8 + $0x58] sm:$0xff] }
 0x21f   : > { %v569_v49 = vpop.xlane.xlu1 %568  ;;  %v571_v51 = vpop.xlane.xlu0 %570  ;;  %v2004_v15 = vpack.c.bf16 %v786_v46, %v785_v45 }
 0x220   : > { %v596_v52 = vmul.f32 0.0078125, %v569_v49  ;;  %v597_v53 = vmul.f32 0.0078125, %v571_v51  ;;  %v626_v58 = vmul.f32 %v2899_v48, %v2899_v48  ;;  %v627_v59 = vmul.f32 %v2903_v44, %v2903_v44 }
 0x222   : > { %v2911_v50 = vsub.f32 %v547_v61, %v596_v52  ;;  %v2915_v54 = vsub.f32 %v548_v63, %v597_v53  ;;  %645 = vadd.xlane.f32.xlu1 %v626_v58  ;;  %647 = vadd.xlane.f32.xlu0 %v627_v59  ;;  %v779_v61 = vld [vmem:[#allocation8 + $0x20] sm:$0xff]  ;;  %v780_v63 = vld [vmem:[#allocation8 + $0x28] sm:$0xff]  ;;  %v789_v58 = vld [vmem:[#allocation8 + $0x70] sm:$0xff] }
 0x223   : > { %v573_v55 = vpop.xlane.xlu1 %572  ;;  %v575_v57 = vpop.xlane.xlu0 %574  ;;  %v1992_v18 = vpack.c.bf16 %v780_v63, %v779_v61  ;;  %v790_v59 = vld [vmem:[#allocation8 + $0x78] sm:$0xff] }
 0x224   : > { %v598_v0 = vmul.f32 0.0078125, %v573_v55  ;;  %v599_v1 = vmul.f32 0.0078125, %v575_v57  ;;  %v628_v6 = vmul.f32 %v2911_v50, %v2911_v50  ;;  %v629_v7 = vmul.f32 %v2915_v54, %v2915_v54 }
 0x225   : > { %1993 = vmatprep.subr.bf16.mxu1 %v1992_v18  ;;  %v2012_v55 = vpack.c.bf16 %v790_v59, %v789_v58 }
 0x226   : > { %v2923_v56 = vsub.f32 %v549_v3, %v598_v0  ;;  %v2927_v60 = vsub.f32 %v550_v5, %v599_v1  ;;  %649 = vadd.xlane.f32.xlu1 %v628_v6  ;;  %651 = vadd.xlane.f32.xlu0 %v629_v7 }
 0x227   : > { %v577_v12 = vpop.xlane.xlu1 %576  ;;  %v579_v13 = vpop.xlane.xlu0 %578  ;;  %1995 = vmatpush3.bf16.msra.mxu1 %v1992_v18 }
 0x228   : > { %v600_v19 = vmul.f32 0.0078125, %v577_v12  ;;  %v601_v25 = vmul.f32 0.0078125, %v579_v13  ;;  %v630_v26 = vmul.f32 %v2923_v56, %v2923_v56  ;;  %v631_v62 = vmul.f32 %v2927_v60, %v2927_v60 }
 0x22a   : > { %v2935_v2 = vsub.f32 %v551_v10, %v600_v19  ;;  %v2939_v3 = vsub.f32 %v552_v11, %v601_v25  ;;  %653 = vadd.xlane.f32.xlu1 %v630_v26  ;;  %655 = vadd.xlane.f32.xlu0 %v631_v62  ;;  %v1996_v10 = vpack.c.bf16 %v782_v29, %v781_v28 }
 0x22b   : > { %v581_v5 = vpop.xlane.xlu1 %580  ;;  %v583_v27 = vpop.xlane.xlu0 %582 }
 0x22c   : > { %v602_v30 = vmul.f32 0.0078125, %v581_v5  ;;  %v603_v31 = vmul.f32 0.0078125, %v583_v27  ;;  %v632_v32 = vmul.f32 %v2935_v2, %v2935_v2  ;;  %v633_v4 = vmul.f32 %v2939_v3, %v2939_v3  ;;  %1997 = vmatprep.subr.bf16.mxu1 %v1996_v10 }
 0x22d   : > { %1999 = vmatpush3.bf16.msra.mxu1 %v1996_v10 }
 0x22e   : > { %v2947_v9 = vsub.f32 %v553_v14, %v602_v30  ;;  %v2951_v11 = vsub.f32 %v554_v17, %v603_v31  ;;  %657 = vadd.xlane.f32.xlu1 %v632_v32  ;;  %659 = vadd.xlane.f32.xlu0 %v633_v4  ;;  %v2000_v14 = vpack.c.bf16 %v784_v37, %v783_v36  ;;  %v2978_v32 = vld [vmem:[%s3434_s3 + $0x1] ss:$0 sm:$0xff]  ;;  %v2984_v37 = vld [vmem:[%s3434_s3 + $0x2] ss:$0 sm:$0xff] }
 0x22f   : > { %v585_v34 = vpop.xlane.xlu1 %584  ;;  %v587_v35 = vpop.xlane.xlu0 %586 }
 0x230   : > { %v604_v38 = vmul.f32 0.0078125, %v585_v34  ;;  %v605_v41 = vmul.f32 0.0078125, %v587_v35  ;;  %v634_v42 = vmul.f32 %v2947_v9, %v2947_v9  ;;  %v635_v8 = vmul.f32 %v2951_v11, %v2951_v11  ;;  %2001 = vmatprep.subr.bf16.mxu1 %v2000_v14 }
 0x231   : > { %2003 = vmatpush3.bf16.msra.mxu1 %v2000_v14 }
 0x232   : > { %v2959_v16 = vsub.f32 %v555_v20, %v604_v38  ;;  %v2963_v17 = vsub.f32 %v556_v23, %v605_v41  ;;  %661 = vadd.xlane.f32.xlu1 %v634_v42  ;;  %663 = vadd.xlane.f32.xlu0 %v635_v8  ;;  %v788_v23 = vld [vmem:[#allocation8 + $0x68] sm:$0xff] }
 0x233   : > { %v589_v43 = vpop.xlane.xlu1 %588  ;;  %2005 = vmatprep.subr.bf16.mxu1 %v2004_v15  ;;  %v2008_v53 = vpack.c.bf16 %v788_v23, %v787_v22 }
 0x234   : > { %v606_v47 = vmul.f32 0.0078125, %v589_v43  ;;  %v636_v49 = vmul.f32 %v2959_v16, %v2959_v16  ;;  %v637_v51 = vmul.f32 %v2963_v17, %v2963_v17 }
 0x235   : > { %2007 = vmatpush3.bf16.msra.mxu1 %v2004_v15 }
 0x236   : > { %v2971_v20 = vsub.f32 %v557_v24, %v606_v47  ;;  %665 = vadd.xlane.f32.xlu1 %v636_v49  ;;  %667 = vadd.xlane.f32.xlu0 %v637_v51 }
 0x237   : > { %2009 = vmatprep.subr.bf16.mxu1 %v2008_v53 }
 0x238   : > { %v638_v52 = vmul.f32 %v2971_v20, %v2971_v20 }
 0x239   : > { %2011 = vmatpush3.bf16.msra.mxu1 %v2008_v53 }
 0x23a   : > { %669 = vadd.xlane.f32.xlu1 %v638_v52  ;;  %2013 = vmatprep.subr.bf16.mxu1 %v2012_v55 }
 0x23d   : > { %2015 = vmatpush3.bf16.msra.mxu1 %v2012_v55 }
 0x2a7   : > { %v640_v21 = vpop.xlane.xlu0 %639 }
 0x2a8   : > { %v671_v24 = vmul.f32 0.0078125, %v640_v21 }
 0x2aa   : > { %v687_v57 = vadd.f32 1e-05, %v671_v24 }
 0x2ab   : > { %v642_v0 = vpop.xlane.xlu1 %641  ;;  %v644_v1 = vpop.xlane.xlu0 %643 }
 0x2ac   : > { %2161 = vrsqrt.f32 %v687_v57  ;;  %v672_v6 = vmul.f32 0.0078125, %v642_v0  ;;  %v673_v7 = vmul.f32 0.0078125, %v644_v1 }
 0x2ae   : > { %v688_v61 = vadd.f32 1e-05, %v672_v6  ;;  %v689_v63 = vadd.f32 1e-05, %v673_v7 }
 0x2af   : > { %v646_v12 = vpop.xlane.xlu1 %645  ;;  %v648_v13 = vpop.xlane.xlu0 %647 }
 0x2b0   : > { %2163 = vrsqrt.f32 %v688_v61  ;;  %v674_v18 = vmul.f32 0.0078125, %v646_v12  ;;  %v675_v19 = vmul.f32 0.0078125, %v648_v13 }
 0x2b1   : > { %2165 = vrsqrt.f32 %v689_v63 }
 0x2b2   : > { %v690_v25 = vadd.f32 1e-05, %v674_v18  ;;  %v691_v26 = vadd.f32 1e-05, %v675_v19 }
 0x2b3   : > { %v650_v62 = vpop.xlane.xlu1 %649  ;;  %v652_v5 = vpop.xlane.xlu0 %651 }
 0x2b4   : > { %2167 = vrsqrt.f32 %v690_v25  ;;  %v676_v27 = vmul.f32 0.0078125, %v650_v62  ;;  %v677_v28 = vmul.f32 0.0078125, %v652_v5 }
 0x2b5   : > { %2169 = vrsqrt.f32 %v691_v26 }
 0x2b6   : > { %v2162_v29 = vpop.eup %2161  ;;  %v692_v30 = vadd.f32 1e-05, %v676_v27  ;;  %v693_v31 = vadd.f32 1e-05, %v677_v28 }
 0x2b7   : > { %v654_v4 = vpop.xlane.xlu1 %653  ;;  %v656_v10 = vpop.xlane.xlu0 %655  ;;  %v719_v34 = vmul.f32 %v2162_v29, %v2881_v33 }
 0x2b8   : > { %2171 = vrsqrt.f32 %v692_v30  ;;  %v678_v35 = vmul.f32 0.0078125, %v654_v4  ;;  %v679_v36 = vmul.f32 0.0078125, %v656_v10 }
 0x2b9   : > { %2173 = vrsqrt.f32 %v693_v31  ;;  %v739_v38 = vmul.f32 %v2978_v32, %v719_v34 }
 0x2ba   : > { %v2164_v41 = vpop.eup %2163  ;;  %v694_v42 = vadd.f32 1e-05, %v678_v35  ;;  %v695_v8 = vadd.f32 1e-05, %v679_v36 }
 0x2bb   : > { %v2166_v14 = vpop.eup %2165  ;;  %v658_v43 = vpop.xlane.xlu1 %657  ;;  %v2988_v46 = vadd.f32 %v2984_v37, %v739_v38  ;;  %v720_v33 = vmul.f32 %v2164_v41, %v2891_v40 }
 0x2bc   : > { %v660_v45 = vpop.xlane.xlu0 %659  ;;  %2175 = vrsqrt.f32 %v694_v42  ;;  %v680_v47 = vmul.f32 0.0078125, %v658_v43  ;;  %v721_v51 = vmul.f32 %v2166_v14, %v2887_v39 }
 0x2bd   : > { %v681_v49 = vmul.f32 0.0078125, %v660_v45  ;;  %2177 = vrsqrt.f32 %v695_v8  ;;  %1872 = vmatprep.mubr.f32.mxu1 %v2988_v46  ;;  %v740_v15 = vmul.f32 %v2978_v32, %v720_v33 }
 0x2be   : > { %v2168_v22 = vpop.eup %2167  ;;  %v696_v23 = vadd.f32 1e-05, %v680_v47  ;;  %v741_v53 = vmul.f32 %v2978_v32, %v721_v51 }
 0x2bf   : > { %v697_v52 = vadd.f32 1e-05, %v681_v49  ;;  %v2170_v58 = vpop.eup %2169  ;;  %v662_v59 = vpop.xlane.xlu1 %661  ;;  %v2996_v40 = vadd.f32 %v2984_v37, %v740_v15  ;;  %v722_v21 = vmul.f32 %v2168_v22, %v2899_v48 }
 0x2c0   : > { %v664_v55 = vpop.xlane.xlu0 %663  ;;  %2179 = vrsqrt.f32 %v696_v23  ;;  %v682_v39 = vmul.f32 0.0078125, %v662_v59  ;;  %v3000_v57 = vadd.f32 %v2984_v37, %v741_v53  ;;  %v723_v1 = vmul.f32 %v2170_v58, %v2903_v44 }
 0x2c1   : > { %v683_v24 = vmul.f32 0.0078125, %v664_v55  ;;  %2181 = vrsqrt.f32 %v697_v52  ;;  %1873 = vmatmul.mubr.f32.vlgmr.msra.gmra.mrb[0].mxu1 %v2996_v40  ;;  %v742_v0 = vmul.f32 %v2978_v32, %v722_v21 }
 0x2c2   : > { %v2172_v6 = vpop.eup %2171  ;;  %v698_v7 = vadd.f32 1e-05, %v682_v39  ;;  %1875 = vmatprep.mubr.f32.mxu1 %v3000_v57  ;;  %v743_v18 = vmul.f32 %v2978_v32, %v723_v1 }
 0x2c3   : > { %v699_v61 = vadd.f32 1e-05, %v683_v24  ;;  %v2174_v63 = vpop.eup %2173  ;;  %v666_v48 = vpop.xlane.xlu1 %665  ;;  %v3007_v13 = vadd.f32 %v2984_v37, %v742_v0  ;;  %v724_v19 = vmul.f32 %v2172_v6, %v2911_v50  ;;  %v1661_v6 = vld [vmem:[%s3434_s3 + $0x3] ss:$0 sm:$0xff] }
 0x2c4   : > { %v668_v12 = vpop.xlane.xlu0 %667  ;;  %2183 = vrsqrt.f32 %v698_v7  ;;  %v684_v25 = vmul.f32 0.0078125, %v666_v48  ;;  %v725_v44 = vmul.f32 %v2174_v63, %v2915_v54  ;;  %v3014_v62 = vadd.f32 %v2984_v37, %v743_v18 }
 0x2c5   : > { %v685_v26 = vmul.f32 0.0078125, %v668_v12  ;;  %2185 = vrsqrt.f32 %v699_v61  ;;  %1876 = vmatmul.mubr.f32.gmra.mrb[2].mxu1 %v3007_v13  ;;  %v744_v5 = vmul.f32 %v2978_v32, %v724_v19 }
 0x2c6   : > { %v2176_v27 = vpop.eup %2175  ;;  %v700_v28 = vadd.f32 1e-05, %v684_v25  ;;  %v745_v30 = vmul.f32 %v2978_v32, %v725_v44  ;;  %1878 = vmatprep.mubr.f32.mxu1 %v3014_v62 }
 0x2c7   : > { %v701_v29 = vadd.f32 1e-05, %v685_v26  ;;  %v2178_v31 = vpop.eup %2177  ;;  %v670_v50 = vpop.xlane.xlu1 %669  ;;  %v3020_v4 = vadd.f32 %v2984_v37, %v744_v5  ;;  %v726_v54 = vmul.f32 %v2176_v27, %v2923_v56 }
 0x2c8   : > { %2187 = vrsqrt.f32 %v700_v28  ;;  %v686_v10 = vmul.f32 0.0078125, %v670_v50  ;;  %v3024_v34 = vadd.f32 %v2984_v37, %v745_v30  ;;  %v727_v35 = vmul.f32 %v2178_v31, %v2927_v60 }
 0x2c9   : > { %2189 = vrsqrt.f32 %v701_v29  ;;  %1879 = vmatmul.mubr.f32.gmra.mrb[4].mxu1 %v3020_v4  ;;  %v746_v36 = vmul.f32 %v2978_v32, %v726_v54 }
 0x2ca   : > { %v2180_v38 = vpop.eup %2179  ;;  %v702_v41 = vadd.f32 1e-05, %v686_v10  ;;  %1881 = vmatprep.mubr.f32.mxu1 %v3024_v34  ;;  %v747_v42 = vmul.f32 %v2978_v32, %v727_v35 }
 0x2cb   : > { %v2182_v8 = vpop.eup %2181  ;;  %v3032_v56 = vadd.f32 %v2984_v37, %v746_v36  ;;  %v728_v14 = vmul.f32 %v2180_v38, %v2935_v2 }
 0x2cc   : > { %2191 = vrsqrt.f32 %v702_v41  ;;  %v3036_v60 = vadd.f32 %v2984_v37, %v747_v42  ;;  %v729_v43 = vmul.f32 %v2182_v8, %v2939_v3 }
 0x2cd   : > { %1882 = vmatmul.mubr.f32.gmra.mrb[6].mxu1 %v3032_v56  ;;  %v748_v45 = vmul.f32 %v2978_v32, %v728_v14 }
 0x2ce   : > { %v2184_v33 = vpop.eup %2183  ;;  %1884 = vmatprep.mubr.f32.mxu1 %v3036_v60  ;;  %v749_v47 = vmul.f32 %v2978_v32, %v729_v43 }
 0x2cf   : > { %v2186_v49 = vpop.eup %2185  ;;  %v3044_v51 = vadd.f32 %v2984_v37, %v748_v45  ;;  %v730_v2 = vmul.f32 %v2184_v33, %v2947_v9 }
 0x2d0   : > { %v3048_v15 = vadd.f32 %v2984_v37, %v749_v47  ;;  %v731_v3 = vmul.f32 %v2186_v49, %v2951_v11 }
 0x2d1   : > { %1885 = vmatmul.mubr.f32.gmra.mrb[8].mxu1 %v3044_v51  ;;  %v750_v22 = vmul.f32 %v2978_v32, %v730_v2 }
 0x2d2   : > { %v2188_v23 = vpop.eup %2187  ;;  %1887 = vmatprep.mubr.f32.mxu1 %v3048_v15  ;;  %v751_v52 = vmul.f32 %v2978_v32, %v731_v3 }
 0x2d3   : > { %v2190_v53 = vpop.eup %2189  ;;  %v3056_v58 = vadd.f32 %v2984_v37, %v750_v22  ;;  %v732_v9 = vmul.f32 %v2188_v23, %v2959_v16 }
 0x2d4   : > { %v3060_v59 = vadd.f32 %v2984_v37, %v751_v52  ;;  %v733_v11 = vmul.f32 %v2190_v53, %v2963_v17 }
 0x2d5   : > { %1888 = vmatmul.mubr.f32.gmra.mrb[10].mxu1 %v3056_v58  ;;  %v752_v55 = vmul.f32 %v2978_v32, %v732_v9 }
 0x2d6   : > { %v2192_v21 = vpop.eup %2191  ;;  %1890 = vmatprep.mubr.f32.mxu1 %v3060_v59  ;;  %v753_v39 = vmul.f32 %v2978_v32, %v733_v11 }
 0x2d7   : > { %v3068_v24 = vadd.f32 %v2984_v37, %v752_v55  ;;  %v734_v0 = vmul.f32 %v2192_v21, %v2971_v20 }
 0x2d8   : > { %v3072_v16 = vadd.f32 %v2984_v37, %v753_v39 }
 0x2d9   : > { %1891 = vmatmul.mubr.f32.gmra.mrb[12].mxu1 %v3068_v24  ;;  %v754_v17 = vmul.f32 %v2978_v32, %v734_v0 }
 0x2da   : > { %1893 = vmatprep.mubr.f32.mxu1 %v3072_v16 }
 0x2db   : > { %v3078_v1 = vadd.f32 %v2984_v37, %v754_v17 }
 0x2dd   : > { %1894 = vmatmul.mubr.f32.gmra.mrb[14].mxu1 %v3078_v1 }
 0x394   : > { %v1874_v7 = vpop.f32.mrb[0].mxu1 }
 0x395   : > { %v3084_v20 = vadd.f32 %v1874_v7, %v1661_v6  ;;  %v861_v61 = vpop.f32.mrb[1].mxu1 }
 0x396   : > { %v3087_v48 = vadd.f32 %v1661_v6, %v861_v61  ;;  %v1220_v61 = vld [vmem:[#allocation9] sm:$0xff] }
 0x397   : > { %v941_v63 = vmax.f32 %v3084_v20, 0.0 }
 0x398   : > { %v1877_v32 = vpop.f32.mrb[2].mxu1  ;;  %v940_v12 = vmax.f32 %v3087_v48, 0.0 }
 0x399   : > { %958 = vadd.xlane.f32.xlu0 %v941_v63  ;;  %v871_v37 = vpop.f32.mrb[3].mxu1  ;;  %v3092_v18 = vadd.f32 %v1877_v32, %v1661_v6  ;;  %v1221_v32 = vld [vmem:[#allocation9 + $0x8] sm:$0xff] }
 0x39a   : > { %v3097_v44 = vadd.f32 %v1661_v6, %v871_v37  ;;  %v2016_v37 = vpack.c.bf16 %v1221_v32, %v1220_v61 }
 0x39b   : > { %v943_v26 = vmax.f32 %v3092_v18, 0.0 }
 0x39c   : > { %v1880_v19 = vpop.f32.mrb[4].mxu1  ;;  %v942_v28 = vmax.f32 %v3097_v44, 0.0  ;;  %2017 = vmatprep.subr.bf16.mxu0 %v2016_v37  ;;  %2048 = vmatprep.subr.bf16.mxu1 %v2016_v37 }
 0x39d   : > { %956 = vadd.xlane.f32.xlu0 %v940_v12  ;;  %v881_v25 = vpop.f32.mrb[5].mxu1  ;;  %v3102_v29 = vadd.f32 %v1880_v19, %v1661_v6  ;;  %2019 = vmatpush3.bf16.msra.mxu0 %v2016_v37 }
 0x39e   : > { %v3109_v10 = vadd.f32 %v1661_v6, %v881_v25  ;;  %2056 = vmatpush3.bf16.msra.mxu1 %v2016_v37 }
 0x39f   : > { %v945_v54 = vmax.f32 %v3102_v29, 0.0 }
 0x3a0   : > { %v1883_v5 = vpop.f32.mrb[6].mxu1  ;;  %v944_v42 = vmax.f32 %v3109_v10, 0.0 }
 0x3a1   : > { %962 = vadd.xlane.f32.xlu0 %v943_v26  ;;  %v891_v27 = vpop.f32.mrb[7].mxu1  ;;  %v3128_v47 = vadd.f32 %v1883_v5, %v1661_v6 }
 0x3a2   : > { %v3119_v8 = vadd.f32 %v1661_v6, %v891_v27 }
 0x3a3   : > { %v947_v52 = vmax.f32 %v3128_v47, 0.0 }
 0x3a4   : > { %v1886_v30 = vpop.f32.mrb[8].mxu1  ;;  %v946_v49 = vmax.f32 %v3119_v8, 0.0 }
 0x3a5   : > { %v3104_v31 = vadd.f32 %v1886_v30, %v1661_v6  ;;  %960 = vadd.xlane.f32.xlu0 %v942_v28  ;;  %v901_v50 = vpop.f32.mrb[9].mxu1 }
 0x3a6   : > { %v3112_v36 = vadd.f32 %v1661_v6, %v901_v50 }
 0x3a7   : > { %v949_v35 = vmax.f32 %v3104_v31, 0.0 }
 0x3a8   : > { %v1889_v38 = vpop.f32.mrb[10].mxu1  ;;  %v948_v14 = vmax.f32 %v3112_v36, 0.0 }
 0x3a9   : > { %966 = vadd.xlane.f32.xlu0 %v945_v54  ;;  %974 = vadd.xlane.f32.xlu1 %v949_v35  ;;  %v911_v41 = vpop.f32.mrb[11].mxu1  ;;  %v3122_v43 = vadd.f32 %v1889_v38, %v1661_v6 }
 0x3aa   : > { %v3132_v3 = vadd.f32 %v1661_v6, %v911_v41 }
 0x3ab   : > { %v951_v2 = vmax.f32 %v3122_v43, 0.0 }
 0x3ac   : > { %v1892_v45 = vpop.f32.mrb[12].mxu1  ;;  %v950_v53 = vmax.f32 %v3132_v3, 0.0 }
 0x3ad   : > { %964 = vadd.xlane.f32.xlu0 %v944_v42  ;;  %972 = vadd.xlane.f32.xlu1 %v948_v14  ;;  %v921_v33 = vpop.f32.mrb[13].mxu1  ;;  %v3140_v9 = vadd.f32 %v1892_v45, %v1661_v6 }
 0x3ae   : > { %v3147_v55 = vadd.f32 %v1661_v6, %v921_v33 }
 0x3af   : > { %v953_v11 = vmax.f32 %v3140_v9, 0.0 }
 0x3b0   : > { %v1895_v22 = vpop.f32.mrb[14].mxu1  ;;  %v952_v21 = vmax.f32 %v3147_v55, 0.0 }
 0x3b1   : > { %968 = vadd.xlane.f32.xlu0 %v946_v49  ;;  %978 = vadd.xlane.f32.xlu1 %v951_v2  ;;  %v931_v23 = vpop.f32.mrb[15].mxu1  ;;  %v3156_v0 = vadd.f32 %v1895_v22, %v1661_v6 }
 0x3b2   : > { %v3152_v39 = vadd.f32 %v1661_v6, %v931_v23 }
 0x3b3   : > { %v955_v7 = vmax.f32 %v3156_v0, 0.0 }
 0x3b4   : > { %v954_v17 = vmax.f32 %v3152_v39, 0.0 }
 0x3b5   : > { %970 = vadd.xlane.f32.xlu0 %v947_v52  ;;  %976 = vadd.xlane.f32.xlu1 %v950_v53 }
 0x3b9   : > { %982 = vadd.xlane.f32.xlu1 %v953_v11 }
 0x3bd   : > { %980 = vadd.xlane.f32.xlu1 %v952_v21 }
 0x3c1   : > { %984 = vadd.xlane.f32.xlu1 %v954_v17 }
 0x3c5   : > { %986 = vadd.xlane.f32.xlu1 %v955_v7 }
 0x426   : > { %v959_v19 = vpop.xlane.xlu0 %958 }
 0x427   : > { %v989_v6 = vmul.f32 0.0078125, %v959_v19  ;;  %v1222_v19 = vld [vmem:[#allocation9 + $0x10] sm:$0xff] }
 0x429   : > { %v3166_v25 = vsub.f32 %v941_v63, %v989_v6  ;;  %v1223_v6 = vld [vmem:[#allocation9 + $0x18] sm:$0xff] }
 0x42a   : > { %v957_v5 = vpop.xlane.xlu0 %956  ;;  %v2020_v31 = vpack.c.bf16 %v1223_v6, %v1222_v19 }
 0x42b   : > { %v988_v27 = vmul.f32 0.0078125, %v957_v5  ;;  %v1021_v30 = vmul.f32 %v3166_v25, %v3166_v25 }
 0x42c   : > { %2021 = vmatprep.subr.bf16.mxu0 %v2020_v31  ;;  %2049 = vmatprep.subr.bf16.mxu1 %v2020_v31 }
 0x42d   : > { %v3172_v50 = vsub.f32 %v940_v12, %v988_v27  ;;  %1038 = vadd.xlane.f32.xlu0 %v1021_v30  ;;  %2023 = vmatpush3.bf16.msra.mxu0 %v2020_v31 }
 0x42e   : > { %v963_v38 = vpop.xlane.xlu0 %962  ;;  %2057 = vmatpush3.bf16.msra.mxu1 %v2020_v31  ;;  %v1230_v31 = vld [vmem:[#allocation9 + $0x50] sm:$0xff] }
 0x42f   : > { %v991_v41 = vmul.f32 0.0078125, %v963_v38  ;;  %v1020_v45 = vmul.f32 %v3172_v50, %v3172_v50 }
 0x431   : > { %v3178_v20 = vsub.f32 %v943_v26, %v991_v41  ;;  %1036 = vadd.xlane.f32.xlu0 %v1020_v45  ;;  %v1224_v45 = vld [vmem:[#allocation9 + $0x20] sm:$0xff] }
 0x432   : > { %v961_v63 = vpop.xlane.xlu0 %960 }
 0x433   : > { %v990_v33 = vmul.f32 0.0078125, %v961_v63  ;;  %v1023_v22 = vmul.f32 %v3178_v20, %v3178_v20  ;;  %v1225_v63 = vld [vmem:[#allocation9 + $0x28] sm:$0xff] }
 0x434   : > { %v2024_v10 = vpack.c.bf16 %v1225_v63, %v1224_v45 }
 0x435   : > { %v3184_v48 = vsub.f32 %v942_v28, %v990_v33  ;;  %1042 = vadd.xlane.f32.xlu0 %v1023_v22 }
 0x436   : > { %v975_v12 = vpop.xlane.xlu1 %974  ;;  %v967_v23 = vpop.xlane.xlu0 %966  ;;  %2025 = vmatprep.subr.bf16.mxu0 %v2024_v10  ;;  %2050 = vmatprep.subr.bf16.mxu1 %v2024_v10 }
 0x437   : > { %v997_v61 = vmul.f32 0.0078125, %v975_v12  ;;  %v993_v32 = vmul.f32 0.0078125, %v967_v23  ;;  %v1022_v18 = vmul.f32 %v3184_v48, %v3184_v48  ;;  %2027 = vmatpush3.bf16.msra.mxu0 %v2024_v10  ;;  %2058 = vmatpush3.bf16.msra.mxu1 %v2024_v10 }
 0x439   : > { %v3190_v26 = vsub.f32 %v949_v35, %v997_v61  ;;  %v3194_v37 = vsub.f32 %v945_v54, %v993_v32  ;;  %1040 = vadd.xlane.f32.xlu0 %v1022_v18  ;;  %v1226_v32 = vld [vmem:[#allocation9 + $0x30] sm:$0xff]  ;;  %v1227_v18 = vld [vmem:[#allocation9 + $0x38] sm:$0xff] }
 0x43a   : > { %v973_v44 = vpop.xlane.xlu1 %972  ;;  %v965_v28 = vpop.xlane.xlu0 %964  ;;  %v2028_v8 = vpack.c.bf16 %v1227_v18, %v1226_v32 }
 0x43b   : > { %v996_v5 = vmul.f32 0.0078125, %v973_v44  ;;  %v992_v27 = vmul.f32 0.0078125, %v965_v28  ;;  %v1029_v30 = vmul.f32 %v3190_v26, %v3190_v26  ;;  %v1025_v38 = vmul.f32 %v3194_v37, %v3194_v37 }
 0x43c   : > { %2029 = vmatprep.subr.bf16.mxu0 %v2028_v8  ;;  %2051 = vmatprep.subr.bf16.mxu1 %v2028_v8 }
 0x43d   : > { %v3202_v35 = vsub.f32 %v948_v14, %v996_v5  ;;  %v3206_v29 = vsub.f32 %v944_v42, %v992_v27  ;;  %1054 = vadd.xlane.f32.xlu1 %v1029_v30  ;;  %1046 = vadd.xlane.f32.xlu0 %v1025_v38  ;;  %v1228_v5 = vld [vmem:[#allocation9 + $0x40] sm:$0xff]  ;;  %v1229_v27 = vld [vmem:[#allocation9 + $0x48] sm:$0xff] }
 0x43e   : > { %v979_v54 = vpop.xlane.xlu1 %978  ;;  %v969_v41 = vpop.xlane.xlu0 %968  ;;  %2031 = vmatpush3.bf16.msra.mxu0 %v2028_v8  ;;  %2059 = vmatpush3.bf16.msra.mxu1 %v2028_v8 }
 0x43f   : > { %v999_v33 = vmul.f32 0.0078125, %v979_v54  ;;  %v994_v22 = vmul.f32 0.0078125, %v969_v41  ;;  %v1028_v12 = vmul.f32 %v3202_v35, %v3202_v35  ;;  %v1024_v36 = vmul.f32 %v3206_v29, %v3206_v29  ;;  %v1231_v54 = vld [vmem:[#allocation9 + $0x58] sm:$0xff] }
 0x440   : > { %v2036_v63 = vpack.c.bf16 %v1231_v54, %v1230_v31 }
 0x441   : > { %v3214_v42 = vsub.f32 %v951_v2, %v999_v33  ;;  %v3218_v14 = vsub.f32 %v946_v49, %v994_v22  ;;  %1052 = vadd.xlane.f32.xlu1 %v1028_v12  ;;  %1044 = vadd.xlane.f32.xlu0 %v1024_v36  ;;  %v1233_v22 = vld [vmem:[#allocation9 + $0x68] sm:$0xff] }
 0x442   : > { %v977_v23 = vpop.xlane.xlu1 %976  ;;  %v971_v61 = vpop.xlane.xlu0 %970 }
 0x443   : > { %v998_v44 = vmul.f32 0.0078125, %v977_v23  ;;  %v995_v28 = vmul.f32 0.0078125, %v971_v61  ;;  %v1031_v19 = vmul.f32 %v3214_v42, %v3214_v42  ;;  %v1026_v43 = vmul.f32 %v3218_v14, %v3218_v14  ;;  %v1235_v61 = vld [vmem:[#allocation9 + $0x78] sm:$0xff] }
 0x445   : > { %v3226_v49 = vsub.f32 %v950_v53, %v998_v44  ;;  %v3230_v2 = vsub.f32 %v947_v52, %v995_v28  ;;  %1058 = vadd.xlane.f32.xlu1 %v1031_v19  ;;  %1048 = vadd.xlane.f32.xlu0 %v1026_v43  ;;  %v2032_v53 = vpack.c.bf16 %v1229_v27, %v1228_v5 }
 0x446   : > { %v983_v6 = vpop.xlane.xlu1 %982 }
 0x447   : > { %v1001_v30 = vmul.f32 0.0078125, %v983_v6  ;;  %v1030_v38 = vmul.f32 %v3226_v49, %v3226_v49  ;;  %v1027_v3 = vmul.f32 %v3230_v2, %v3230_v2  ;;  %2033 = vmatprep.subr.bf16.mxu0 %v2032_v53  ;;  %2052 = vmatprep.subr.bf16.mxu1 %v2032_v53 }
 0x448   : > { %2035 = vmatpush3.bf16.msra.mxu0 %v2032_v53  ;;  %2060 = vmatpush3.bf16.msra.mxu1 %v2032_v53 }
 0x449   : > { %v3238_v47 = vsub.f32 %v953_v11, %v1001_v30  ;;  %1056 = vadd.xlane.f32.xlu1 %v1030_v38  ;;  %1050 = vadd.xlane.f32.xlu0 %v1027_v3  ;;  %v1232_v11 = vld [vmem:[#allocation9 + $0x60] sm:$0xff] }
 0x44a   : > { %v981_v52 = vpop.xlane.xlu1 %980  ;;  %2037 = vmatprep.subr.bf16.mxu0 %v2036_v63  ;;  %2053 = vmatprep.subr.bf16.mxu1 %v2036_v63  ;;  %v2040_v10 = vpack.c.bf16 %v1233_v22, %v1232_v11 }
 0x44b   : > { %v1000_v41 = vmul.f32 0.0078125, %v981_v52  ;;  %v1033_v45 = vmul.f32 %v3238_v47, %v3238_v47  ;;  %v3263_v52 = vld [vmem:[%s3434_s3 + $0x4] ss:$0 sm:$0xff] }
 0x44c   : > { %2039 = vmatpush3.bf16.msra.mxu0 %v2036_v63  ;;  %2061 = vmatpush3.bf16.msra.mxu1 %v2036_v63 }
 0x44d   : > { %v3244_v33 = vsub.f32 %v952_v21, %v1000_v41  ;;  %1062 = vadd.xlane.f32.xlu1 %v1033_v45  ;;  %2041 = vmatprep.subr.bf16.mxu0 %v2040_v10  ;;  %v1234_v21 = vld [vmem:[#allocation9 + $0x70] sm:$0xff] }
 0x44e   : > { %v985_v9 = vpop.xlane.xlu1 %984  ;;  %2054 = vmatprep.subr.bf16.mxu1 %v2040_v10  ;;  %v2044_v44 = vpack.c.bf16 %v1235_v61, %v1234_v21 }
 0x44f   : > { %v1002_v12 = vmul.f32 0.0078125, %v985_v9  ;;  %v1032_v36 = vmul.f32 %v3244_v33, %v3244_v33 }
 0x450   : > { %2043 = vmatpush3.bf16.msra.mxu0 %v2040_v10  ;;  %2062 = vmatpush3.bf16.msra.mxu1 %v2040_v10 }
 0x451   : > { %v3250_v23 = vsub.f32 %v954_v17, %v1002_v12  ;;  %1060 = vadd.xlane.f32.xlu1 %v1032_v36  ;;  %2045 = vmatprep.subr.bf16.mxu0 %v2044_v44 }
 0x452   : > { %v987_v55 = vpop.xlane.xlu1 %986  ;;  %2055 = vmatprep.subr.bf16.mxu1 %v2044_v44 }
 0x453   : > { %v1003_v32 = vmul.f32 0.0078125, %v987_v55  ;;  %v1034_v18 = vmul.f32 %v3250_v23, %v3250_v23  ;;  %v3270_v55 = vld [vmem:[%s3434_s3 + $0x5] ss:$0 sm:$0xff] }
 0x454   : > { %2047 = vmatpush3.bf16.msra.mxu0 %v2044_v44  ;;  %2063 = vmatpush3.bf16.msra.mxu1 %v2044_v44 }
 0x455   : > { %v3256_v28 = vsub.f32 %v955_v7, %v1003_v32  ;;  %1064 = vadd.xlane.f32.xlu1 %v1034_v18 }
 0x457   : > { %v1035_v39 = vmul.f32 %v3256_v28, %v3256_v28 }
 0x459   : > { %1066 = vadd.xlane.f32.xlu1 %v1035_v39 }
 0x4ba   : > { %v1039_v17 = vpop.xlane.xlu0 %1038 }
 0x4bb   : > { %v1069_v19 = vmul.f32 0.0078125, %v1039_v17 }
 0x4bd   : > { %v1085_v43 = vadd.f32 1e-05, %v1069_v19 }
 0x4be   : > { %v1037_v8 = vpop.xlane.xlu0 %1036 }
 0x4bf   : > { %2193 = vrsqrt.f32 %v1085_v43  ;;  %v1068_v6 = vmul.f32 0.0078125, %v1037_v8 }
 0x4c1   : > { %v1084_v5 = vadd.f32 1e-05, %v1068_v6 }
 0x4c2   : > { %v1043_v27 = vpop.xlane.xlu0 %1042 }
 0x4c3   : > { %2195 = vrsqrt.f32 %v1084_v5  ;;  %v1071_v0 = vmul.f32 0.0078125, %v1043_v27 }
 0x4c5   : > { %v1087_v7 = vadd.f32 1e-05, %v1071_v0 }
 0x4c6   : > { %v1041_v30 = vpop.xlane.xlu0 %1040 }
 0x4c7   : > { %2197 = vrsqrt.f32 %v1087_v7  ;;  %v1070_v38 = vmul.f32 0.0078125, %v1041_v30 }
 0x4c9   : > { %v2194_v3 = vpop.eup %2193  ;;  %v1086_v53 = vadd.f32 1e-05, %v1070_v38 }
 0x4ca   : > { %v1117_v31 = vmul.f32 %v2194_v3, %v3166_v25  ;;  %v1055_v54 = vpop.xlane.xlu1 %1054  ;;  %v1047_v41 = vpop.xlane.xlu0 %1046 }
 0x4cb   : > { %2199 = vrsqrt.f32 %v1086_v53  ;;  %v1077_v45 = vmul.f32 0.0078125, %v1055_v54  ;;  %v1073_v63 = vmul.f32 0.0078125, %v1047_v41 }
 0x4cc   : > { %v1137_v11 = vmul.f32 %v3263_v52, %v1117_v31 }
 0x4cd   : > { %v2196_v9 = vpop.eup %2195  ;;  %v1093_v22 = vadd.f32 1e-05, %v1077_v45  ;;  %v1089_v12 = vadd.f32 1e-05, %v1073_v63 }
 0x4ce   : > { %v1053_v36 = vpop.xlane.xlu1 %1052  ;;  %v1045_v10 = vpop.xlane.xlu0 %1044  ;;  %v1116_v21 = vmul.f32 %v2196_v9, %v3172_v50  ;;  %v1157_v17 = vadd.f32 %v3270_v55, %v1137_v11 }
 0x4cf   : > { %2201 = vrsqrt.f32 %v1093_v22  ;;  %v1076_v25 = vmul.f32 0.0078125, %v1053_v36  ;;  %v1072_v61 = vmul.f32 0.0078125, %v1045_v10 }
 0x4d0   : > { %2203 = vrsqrt.f32 %v1089_v12  ;;  %v1136_v32 = vmul.f32 %v3263_v52, %v1116_v21  ;;  %v1173_v38 = vadd.f32 %v1157_v17, %v2996_v40 }
 0x4d1   : > { %v2198_v18 = vpop.eup %2197  ;;  %v1092_v44 = vadd.f32 1e-05, %v1076_v25  ;;  %v1088_v39 = vadd.f32 1e-05, %v1072_v61 }
 0x4d2   : > { %v1059_v19 = vpop.xlane.xlu1 %1058  ;;  %v1049_v43 = vpop.xlane.xlu0 %1048  ;;  %v1156_v8 = vadd.f32 %v3270_v55, %v1136_v32  ;;  %v1119_v6 = vmul.f32 %v2198_v18, %v3178_v20 }
 0x4d3   : > { %2205 = vrsqrt.f32 %v1092_v44  ;;  %v1079_v5 = vmul.f32 0.0078125, %v1059_v19  ;;  %v1074_v50 = vmul.f32 0.0078125, %v1049_v43 }
 0x4d4   : > { %2207 = vrsqrt.f32 %v1088_v39  ;;  %v1172_v27 = vadd.f32 %v1156_v8, %v2988_v46  ;;  %v1139_v3 = vmul.f32 %v3263_v52, %v1119_v6 }
 0x4d5   : > { %v2200_v0 = vpop.eup %2199  ;;  %v1095_v7 = vadd.f32 1e-05, %v1079_v5  ;;  %v1090_v30 = vadd.f32 1e-05, %v1074_v50 }
 0x4d6   : > { %v1057_v53 = vpop.xlane.xlu1 %1056  ;;  %1928 = vmatprep.mubr.f32.mxu0 %v1172_v27  ;;  %v1051_v31 = vpop.xlane.xlu0 %1050  ;;  %v1118_v54 = vmul.f32 %v2200_v0, %v3184_v48  ;;  %v1159_v11 = vadd.f32 %v3270_v55, %v1139_v3 }
 0x4d7   : > { %2209 = vrsqrt.f32 %v1095_v7  ;;  %v1078_v20 = vmul.f32 0.0078125, %v1057_v53  ;;  %v1075_v41 = vmul.f32 0.0078125, %v1051_v31  ;;  %1929 = vmatmul.mubr.f32.vlgmr.msra.gmra.mrb[16].mxu0 %v1173_v38 }
 0x4d8   : > { %2211 = vrsqrt.f32 %v1090_v30  ;;  %v1138_v45 = vmul.f32 %v3263_v52, %v1118_v54  ;;  %v1175_v18 = vadd.f32 %v1159_v11, %v3007_v13 }
 0x4d9   : > { %v2202_v46 = vpop.eup %2201  ;;  %v1094_v63 = vadd.f32 1e-05, %v1078_v20  ;;  %v1091_v9 = vadd.f32 1e-05, %v1075_v41 }
 0x4da   : > { %v2204_v40 = vpop.eup %2203  ;;  %v1125_v22 = vmul.f32 %v2202_v46, %v3190_v26  ;;  %v1063_v12 = vpop.xlane.xlu1 %1062  ;;  %v1158_v36 = vadd.f32 %v3270_v55, %v1138_v45 }
 0x4db   : > { %2213 = vrsqrt.f32 %v1094_v63  ;;  %v1081_v48 = vmul.f32 0.0078125, %v1063_v12  ;;  %v1121_v10 = vmul.f32 %v2204_v40, %v3194_v37 }
 0x4dc   : > { %v1145_v21 = vmul.f32 %v3263_v52, %v1125_v22  ;;  %2215 = vrsqrt.f32 %v1091_v9  ;;  %v1174_v25 = vadd.f32 %v1158_v36, %v3000_v57 }
 0x4dd   : > { %v2206_v61 = vpop.eup %2205  ;;  %v1097_v32 = vadd.f32 1e-05, %v1081_v48  ;;  %v1141_v17 = vmul.f32 %v3263_v52, %v1121_v10 }
 0x4de   : > { %v2208_v44 = vpop.eup %2207  ;;  %v1061_v39 = vpop.xlane.xlu1 %1060  ;;  %1931 = vmatprep.mubr.f32.mxu0 %v1174_v25  ;;  %v1124_v26 = vmul.f32 %v2206_v61, %v3202_v35  ;;  %v1165_v57 = vadd.f32 %v3270_v55, %v1145_v21 }
 0x4df   : > { %2217 = vrsqrt.f32 %v1097_v32  ;;  %v1080_v19 = vmul.f32 0.0078125, %v1061_v39  ;;  %1932 = vmatmul.mubr.f32.gmra.mrb[18].mxu0 %v1175_v18  ;;  %v1120_v37 = vmul.f32 %v2208_v44, %v3206_v29  ;;  %v1161_v35 = vadd.f32 %v3270_v55, %v1141_v17 }
 0x4e0   : > { %v1144_v43 = vmul.f32 %v3263_v52, %v1124_v26  ;;  %v1181_v3 = vadd.f32 %v1165_v57, %v3044_v51 }
 0x4e1   : > { %v2210_v8 = vpop.eup %2209  ;;  %v1096_v6 = vadd.f32 1e-05, %v1080_v19  ;;  %v1140_v13 = vmul.f32 %v3263_v52, %v1120_v37  ;;  %v1177_v46 = vadd.f32 %v1161_v35, %v3020_v4 }
 0x4e2   : > { %v2212_v5 = vpop.eup %2211  ;;  %v1065_v50 = vpop.xlane.xlu1 %1064  ;;  %v1164_v27 = vadd.f32 %v3270_v55, %v1144_v43  ;;  %v1127_v0 = vmul.f32 %v2210_v8, %v3214_v42 }
 0x4e3   : > { %2219 = vrsqrt.f32 %v1096_v6  ;;  %v1082_v7 = vmul.f32 0.0078125, %v1065_v50  ;;  %v1160_v29 = vadd.f32 %v3270_v55, %v1140_v13  ;;  %v1122_v30 = vmul.f32 %v2212_v5, %v3218_v14 }
 0x4e4   : > { %v1180_v38 = vadd.f32 %v1164_v27, %v3036_v60  ;;  %v1147_v41 = vmul.f32 %v3263_v52, %v1127_v0 }
 0x4e5   : > { %v2214_v53 = vpop.eup %2213  ;;  %v1098_v31 = vadd.f32 1e-05, %v1082_v7  ;;  %v1176_v54 = vadd.f32 %v1160_v29, %v3014_v62  ;;  %v1142_v20 = vmul.f32 %v3263_v52, %v1122_v30 }
 0x4e6   : > { %v2216_v45 = vpop.eup %2215  ;;  %1940 = vmatprep.mubr.f32.mxu1 %v1180_v38  ;;  %v1067_v42 = vpop.xlane.xlu1 %1066  ;;  %v1126_v63 = vmul.f32 %v2214_v53, %v3226_v49  ;;  %v1167_v4 = vadd.f32 %v3270_v55, %v1147_v41 }
 0x4e7   : > { %2221 = vrsqrt.f32 %v1098_v31  ;;  %v1083_v14 = vmul.f32 0.0078125, %v1067_v42  ;;  %1934 = vmatprep.mubr.f32.mxu0 %v1176_v54  ;;  %1941 = vmatmul.mubr.f32.vlgmr.msra.gmra.mrb[16].mxu1 %v1181_v3  ;;  %v1162_v60 = vadd.f32 %v3270_v55, %v1142_v20  ;;  %v1123_v51 = vmul.f32 %v2216_v45, %v3230_v2 }
 0x4e8   : > { %1935 = vmatmul.mubr.f32.gmra.mrb[20].mxu0 %v1177_v46  ;;  %v1146_v62 = vmul.f32 %v3263_v52, %v1126_v63  ;;  %v1183_v21 = vadd.f32 %v1167_v4, %v3056_v58 }
 0x4e9   : > { %v2218_v9 = vpop.eup %2217  ;;  %v1099_v11 = vadd.f32 1e-05, %v1083_v14  ;;  %v1178_v40 = vadd.f32 %v1162_v60, %v3024_v34  ;;  %v1143_v22 = vmul.f32 %v3263_v52, %v1123_v51 }
 0x4ea   : > { %v1166_v49 = vadd.f32 %v3270_v55, %v1146_v62  ;;  %v1129_v12 = vmul.f32 %v2218_v9, %v3238_v47 }
 0x4eb   : > { %2223 = vrsqrt.f32 %v1099_v11  ;;  %1937 = vmatprep.mubr.f32.mxu0 %v1178_v40  ;;  %v1163_v36 = vadd.f32 %v3270_v55, %v1143_v22 }
 0x4ec   : > { %v1182_v2 = vadd.f32 %v1166_v49, %v3048_v15  ;;  %v1149_v34 = vmul.f32 %v3263_v52, %v1129_v12 }
 0x4ed   : > { %v2220_v48 = vpop.eup %2219  ;;  %v1179_v10 = vadd.f32 %v1163_v36, %v3032_v56 }
 0x4ee   : > { %1943 = vmatprep.mubr.f32.mxu1 %v1182_v2  ;;  %v1128_v25 = vmul.f32 %v2220_v48, %v3244_v33  ;;  %v1169_v32 = vadd.f32 %v3270_v55, %v1149_v34 }
 0x4ef   : > { %1938 = vmatmul.mubr.f32.gmra.mrb[22].mxu0 %v1179_v10  ;;  %1944 = vmatmul.mubr.f32.gmra.mrb[18].mxu1 %v1183_v21 }
 0x4f0   : > { %v1148_v47 = vmul.f32 %v3263_v52, %v1128_v25  ;;  %v1185_v39 = vadd.f32 %v1169_v32, %v3068_v24  ;;  %v3337_v24 = vld [vmem:[%s3436_s5] ss:$0 sm:$0xff] }
 0x4f1   : > { %v2222_v61 = vpop.eup %2221 }
 0x4f2   : > { %v1168_v18 = vadd.f32 %v3270_v55, %v1148_v47  ;;  %v1130_v15 = vmul.f32 %v2222_v61, %v3250_v23 }
 0x4f4   : > { %v1184_v56 = vadd.f32 %v1168_v18, %v3060_v59  ;;  %v1150_v58 = vmul.f32 %v3263_v52, %v1130_v15 }
 0x4f5   : > { %v2224_v44 = vpop.eup %2223 }
 0x4f6   : > { %1946 = vmatprep.mubr.f32.mxu1 %v1184_v56  ;;  %v1170_v33 = vadd.f32 %v3270_v55, %v1150_v58  ;;  %v1131_v26 = vmul.f32 %v2224_v44, %v3256_v28 }
 0x4f7   : > { %1947 = vmatmul.mubr.f32.gmra.mrb[20].mxu1 %v1185_v39 }
 0x4f8   : > { %v1186_v17 = vadd.f32 %v1170_v33, %v3072_v16  ;;  %v1151_v19 = vmul.f32 %v3263_v52, %v1131_v26 }
 0x4fa   : > { %1949 = vmatprep.mubr.f32.mxu1 %v1186_v17  ;;  %v1171_v23 = vadd.f32 %v3270_v55, %v1151_v19 }
 0x4fc   : > { %v1187_v59 = vadd.f32 %v1171_v23, %v3078_v1 }
 0x4fe   : > { %1950 = vmatmul.mubr.f32.gmra.mrb[22].mxu1 %v1187_v59 }
 0x5aa   : > { %v1930_v37 = vpop.f32.mrb[16].mxu0 }
 0x5ab   : > { %v1315_v43 = vadd.f32 %v1930_v37, %v3337_v24  ;;  %v1309_v28 = vpop.f32.mrb[17].mxu0 }
 0x5ac   : > { %v1310_v57 = vadd.f32 %v3337_v24, %v1309_v28 }
 0x5ad   : > { %v1666_v16 = vmul.f32 -1.442695, %v1315_v43 }
 0x5ae   : > { %v1665_v8 = vmul.f32 -1.442695, %v1310_v57 }
 0x5af   : > { %2225 = vpow2.f32 %v1666_v16 }
 0x5b0   : > { %2227 = vpow2.f32 %v1665_v8 }
 0x5b2   : > { %v1933_v52 = vpop.f32.mrb[18].mxu0 }
 0x5b3   : > { %v1325_v55 = vadd.f32 %v1933_v52, %v3337_v24  ;;  %v1319_v1 = vpop.f32.mrb[19].mxu0 }
 0x5b4   : > { %v1320_v6 = vadd.f32 %v3337_v24, %v1319_v1 }
 0x5b5   : > { %v1668_v13 = vmul.f32 -1.442695, %v1325_v55 }
 0x5b6   : > { %v1667_v5 = vmul.f32 -1.442695, %v1320_v6 }
 0x5b7   : > { %2229 = vpow2.f32 %v1668_v13 }
 0x5b8   : > { %2231 = vpow2.f32 %v1667_v5 }
 0x5b9   : > { %v2226_v50 = vpop.eup %2225 }
 0x5ba   : > { %v2228_v27 = vpop.eup %2227  ;;  %v1437_v35 = vadd.f32 1.0, %v2226_v50  ;;  %v1942_v0 = vpop.f32.mrb[16].mxu1 }
 0x5bb   : > { %v1436_v7 = vadd.f32 1.0, %v2228_v27  ;;  %v1936_v29 = vpop.f32.mrb[20].mxu0  ;;  %v1355_v30 = vadd.f32 %v1942_v0, %v3337_v24  ;;  %v1349_v38 = vpop.f32.mrb[17].mxu1 }
 0x5bc   : > { %2233 = vrcp.f32 %v1437_v35  ;;  %v1335_v3 = vadd.f32 %v1936_v29, %v3337_v24  ;;  %v1329_v53 = vpop.f32.mrb[21].mxu0  ;;  %v1350_v31 = vadd.f32 %v3337_v24, %v1349_v38 }
 0x5bd   : > { %2235 = vrcp.f32 %v1436_v7  ;;  %v1674_v54 = vmul.f32 -1.442695, %v1355_v30  ;;  %v1330_v20 = vadd.f32 %v3337_v24, %v1329_v53 }
 0x5be   : > { %v1670_v41 = vmul.f32 -1.442695, %v1335_v3  ;;  %v1673_v45 = vmul.f32 -1.442695, %v1350_v31 }
 0x5bf   : > { %2237 = vpow2.f32 %v1674_v54  ;;  %v1669_v42 = vmul.f32 -1.442695, %v1330_v20 }
 0x5c0   : > { %2239 = vpow2.f32 %v1670_v41 }
 0x5c1   : > { %v2230_v46 = vpop.eup %2229  ;;  %2241 = vpow2.f32 %v1669_v42 }
 0x5c2   : > { %v2232_v63 = vpop.eup %2231  ;;  %v1439_v14 = vadd.f32 1.0, %v2230_v46  ;;  %2243 = vpow2.f32 %v1673_v45  ;;  %v1939_v60 = vpop.f32.mrb[22].mxu0 }
 0x5c3   : > { %v1945_v51 = vpop.f32.mrb[18].mxu1  ;;  %v1438_v62 = vadd.f32 1.0, %v2232_v63  ;;  %v1345_v9 = vadd.f32 %v1939_v60, %v3337_v24  ;;  %v1339_v11 = vpop.f32.mrb[23].mxu0 }
 0x5c4   : > { %v1365_v40 = vadd.f32 %v1945_v51, %v3337_v24  ;;  %v1359_v22 = vpop.f32.mrb[19].mxu1  ;;  %2245 = vrcp.f32 %v1439_v14  ;;  %v1340_v4 = vadd.f32 %v3337_v24, %v1339_v11 }
 0x5c5   : > { %v1360_v49 = vadd.f32 %v3337_v24, %v1359_v22  ;;  %2247 = vrcp.f32 %v1438_v62  ;;  %v1672_v12 = vmul.f32 -1.442695, %v1345_v9 }
 0x5c6   : > { %v1676_v36 = vmul.f32 -1.442695, %v1365_v40  ;;  %v2234_v2 = vpop.eup %2233  ;;  %v1671_v48 = vmul.f32 -1.442695, %v1340_v4 }
 0x5c7   : > { %v1675_v10 = vmul.f32 -1.442695, %v1360_v49  ;;  %v2236_v21 = vpop.eup %2235  ;;  %1485 = vst [vmem:[%s3353_s14 + $0x8] sm:$0xff] %v2234_v2  ;;  %2249 = vpow2.f32 %v1672_v12 }
 0x5c8   : > { %1484 = vst [vmem:[%s3353_s14] sm:$0xff] %v2236_v21  ;;  %2251 = vpow2.f32 %v1671_v48 }
 0x5c9   : > { %v2238_v34 = vpop.eup %2237  ;;  %2253 = vpow2.f32 %v1676_v36 }
 0x5ca   : > { %v2240_v25 = vpop.eup %2239  ;;  %v1445_v47 = vadd.f32 1.0, %v2238_v34  ;;  %2255 = vpow2.f32 %v1675_v10  ;;  %v1948_v61 = vpop.f32.mrb[20].mxu1 }
 0x5cb   : > { %v2242_v32 = vpop.eup %2241  ;;  %v1441_v18 = vadd.f32 1.0, %v2240_v25  ;;  %v1375_v15 = vadd.f32 %v1948_v61, %v3337_v24  ;;  %v1369_v56 = vpop.f32.mrb[21].mxu1 }
 0x5cc   : > { %v2244_v58 = vpop.eup %2243  ;;  %2257 = vrcp.f32 %v1445_v47  ;;  %v1440_v44 = vadd.f32 1.0, %v2242_v32  ;;  %v1370_v39 = vadd.f32 %v3337_v24, %v1369_v56 }
 0x5cd   : > { %2259 = vrcp.f32 %v1441_v18  ;;  %v1444_v33 = vadd.f32 1.0, %v2244_v58  ;;  %v1678_v26 = vmul.f32 -1.442695, %v1375_v15 }
 0x5ce   : > { %v2246_v17 = vpop.eup %2245  ;;  %2261 = vrcp.f32 %v1440_v44  ;;  %v1677_v19 = vmul.f32 -1.442695, %v1370_v39 }
 0x5cf   : > { %v2248_v23 = vpop.eup %2247  ;;  %1487 = vst [vmem:[%s3353_s14 + $0x18] sm:$0xff] %v2246_v17  ;;  %2263 = vrcp.f32 %v1444_v33 }
 0x5d0   : > { %1486 = vst [vmem:[%s3353_s14 + $0x10] sm:$0xff] %v2248_v23  ;;  %2265 = vpow2.f32 %v1678_v26 }
 0x5d1   : > { %v2250_v59 = vpop.eup %2249  ;;  %2267 = vpow2.f32 %v1677_v19  ;;  %v1951_v37 = vpop.f32.mrb[22].mxu1 }
 0x5d2   : > { %v2252_v43 = vpop.eup %2251  ;;  %v1443_v28 = vadd.f32 1.0, %v2250_v59  ;;  %v1385_v57 = vadd.f32 %v1951_v37, %v3337_v24  ;;  %v1379_v16 = vpop.f32.mrb[23].mxu1 }
 0x5d3   : > { %v2254_v8 = vpop.eup %2253  ;;  %v1442_v52 = vadd.f32 1.0, %v2252_v43  ;;  %v1380_v55 = vadd.f32 %v3337_v24, %v1379_v16 }
 0x5d4   : > { %v2256_v1 = vpop.eup %2255  ;;  %2269 = vrcp.f32 %v1443_v28  ;;  %v1447_v6 = vadd.f32 1.0, %v2254_v8  ;;  %v1680_v13 = vmul.f32 -1.442695, %v1385_v57 }
 0x5d5   : > { %2271 = vrcp.f32 %v1442_v52  ;;  %v1446_v5 = vadd.f32 1.0, %v2256_v1  ;;  %v1679_v50 = vmul.f32 -1.442695, %v1380_v55 }
 0x5d6   : > { %v2258_v27 = vpop.eup %2257  ;;  %2273 = vrcp.f32 %v1447_v6 }
 0x5d7   : > { %v2260_v35 = vpop.eup %2259  ;;  %1493 = vst [vmem:[%s3353_s14 + $0x48] sm:$0xff] %v2258_v27  ;;  %2275 = vrcp.f32 %v1446_v5 }
 0x5d8   : > { %v2262_v0 = vpop.eup %2261  ;;  %1489 = vst [vmem:[%s3353_s14 + $0x28] sm:$0xff] %v2260_v35  ;;  %2277 = vpow2.f32 %v1680_v13 }
 0x5d9   : > { %v2264_v24 = vpop.eup %2263  ;;  %1488 = vst [vmem:[%s3353_s14 + $0x20] sm:$0xff] %v2262_v0  ;;  %2279 = vpow2.f32 %v1679_v50 }
 0x5da   : > { %v2266_v7 = vpop.eup %2265  ;;  %1492 = vst [vmem:[%s3353_s14 + $0x40] sm:$0xff] %v2264_v24 }
 0x5db   : > { %v2268_v29 = vpop.eup %2267  ;;  %v1449_v30 = vadd.f32 1.0, %v2266_v7 }
 0x5dc   : > { %v1448_v38 = vadd.f32 1.0, %v2268_v29 }
 0x5dd   : > { %2281 = vrcp.f32 %v1449_v30 }
 0x5de   : > { %v2270_v3 = vpop.eup %2269  ;;  %2283 = vrcp.f32 %v1448_v38 }
 0x5df   : > { %v2272_v53 = vpop.eup %2271  ;;  %1491 = vst [vmem:[%s3353_s14 + $0x38] sm:$0xff] %v2270_v3 }
 0x5e0   : > { %v2274_v31 = vpop.eup %2273  ;;  %1490 = vst [vmem:[%s3353_s14 + $0x30] sm:$0xff] %v2272_v53 }
 0x5e1   : > { %v2276_v54 = vpop.eup %2275  ;;  %1495 = vst [vmem:[%s3353_s14 + $0x58] sm:$0xff] %v2274_v31 }
 0x5e2   : > { %v2278_v20 = vpop.eup %2277  ;;  %1494 = vst [vmem:[%s3353_s14 + $0x50] sm:$0xff] %v2276_v54 }
 0x5e3   : > { %v2280_v41 = vpop.eup %2279  ;;  %v1451_v45 = vadd.f32 1.0, %v2278_v20 }
 0x5e4   : > { %v1450_v42 = vadd.f32 1.0, %v2280_v41 }
 0x5e5   : > { %2285 = vrcp.f32 %v1451_v45 }
 0x5e6   : > { %2287 = vrcp.f32 %v1450_v42 }
 0x5e7   : > { %v2282_v46 = vpop.eup %2281 }
 0x5e8   : > { %v2284_v63 = vpop.eup %2283  ;;  %1497 = vst [vmem:[%s3353_s14 + $0x68] sm:$0xff] %v2282_v46 }
 0x5e9   : > { %1496 = vst [vmem:[%s3353_s14 + $0x60] sm:$0xff] %v2284_v63 }
 0x5ef   : > { %v2286_v14 = vpop.eup %2285 }
 0x5f0   : > { %v2288_v60 = vpop.eup %2287  ;;  %1499 = vst [vmem:[%s3353_s14 + $0x78] sm:$0xff] %v2286_v14 }
 0x5f1   : > { %1498 = vst [vmem:[%s3353_s14 + $0x70] sm:$0xff] %v2288_v60 }
 0x5f2   : > { %2416 = shalt.err (!%p2413_p0)
}
 0x5f3   : > { %s2417_s8 = scalar_lea.hbm %s3378_s18, 2048  ;;  %s2421_s16 = scalar_lea.hbm %s3461_s17, 4096 }
 0x5f4   : > { %p2418_p4 = scmp.ne.s32.totalorder %s3378_s18, %s2417_s8  ;;  %p2422_p12 = scmp.lt.u32.totalorder %s3378_s18, %s3461_s17 }
 0x5f5   : > { %p2423_p1 = scmp.lt.u32.totalorder %s2421_s16, %s2417_s8  ;;  %p2425_p13 = scmp.lt.u32.totalorder %s2417_s8, %s3378_s18 }
 0x5f6   : > { %p2419_p2 = pnand %p2418_p4, %p2699_p10 }
 0x5f7   : > { %p2424_p11 = por %p2423_p1, %p2422_p12 }
 0x5f8   : > { %p2420_p8 = pneg %p2419_p2 }
 0x5f9   : > { %p2426_p6 = por %p2425_p13, %p2424_p11 }
 0x5fb   : > { %p2427_p3 = pnand %p2426_p6, %p2420_p8 }
 0x5fd   : > { %2430 = shalt.err (!%p2427_p3)
}
 0x5fe   : > { %s2502_s20 = smov 128   ;;  %s2503_s7 = smov 8  }
 0x5ff   : > { %2078 = dma.vmem_to_hbm [thread:$0]  (%p2699_p10), %s3380_s29, 2048, %s3378_s18, %s1501_s30, %s2502_s20, %s2502_s20, %s2503_s7  }
 0x600 PF: > { %s3462_s9 = sld [smem:[#allocation16_spill]]  ;;  %s3463_s11 = sld [smem:[#allocation17_spill]] }
 0x601   : > { %p3465_p7 = scmp.ge.s32.totalorder %s2493_s26, 2 }
 0x606   : > { %s1530_s24 = sand.u32 1, %s3462_s9   ;;  %p3464_p5 = scmp.ne.s32.totalorder %s3463_s11, 0 }
 0x607   : > { %s1531_s6 = scalar_lea.sflag [#allocation5], %s1530_s24 }
 0x608   : > { %p2095_p9 = pnand %p3465_p7, %p3464_p5 }
 0x60a   : > { %2468 = dma.done.wait (!%p2095_p9), %s1531_s6, 2048  }
 0x60b   : > { %2470 = vsyncadd (!%p2095_p9), %s1531_s6, 4294965248  ;;  %s24_s26 = sadd.s32 1, %s2493_s26   ;;  %s3466_s21 = smov %s2477_s22 }
 0x60c   : > { %p21_p0 = scmp.ge.s32.totalorder %s24_s26, 4   ;;  %s3467_s22 = smov %s2481_s23 }
 0x60d   : > { %s3468_s23 = smov %s2711_s27  ;;  %s3469_s24 = smov %s2489_s25 }
 0x60e   : > { %s3470_s25 = smov %s3472_s12  ;;  %23 = sbr.rel (!%p21_p0) target bundleno = 10 (0xa), region = 109 }
 0x615   :  { %1536 = vsyncpa [#allocation4], 1 }
 0x616   :  { %1538 = vsyncpa [#allocation4 + $0x1], 1 }
 0x617   :  { %1539 = vsyncpa [#allocation7], 1 }
 0x618   :  { %1540 = vsyncpa [#allocation10], 1 }
 0x619   :  { %1541 = vsyncpa [#allocation5], 1 }
 0x61a   :  { %1543 = vsyncpa [#allocation5 + $0x1], 1 }

</bundles_post_ra>
